<compile_context>
chip_gen: v7x
topology: tpu7x:2x2x1
jax: 0.10.0
libtpu: 0.0.40
codegen_flags: <defaults>
</compile_context>

<pallas_src>
import jax
import jax.numpy as jnp
from jax.experimental import pallas as pl
from jax.experimental.pallas import tpu as pltpu


def _cat_kernel(*refs):
    """Copy each per-layer (tn, F_l) block into its column slab of the (tn, sum F_l) output."""
    x_refs, o_ref = refs[:-1], refs[-1]
    off = 0
    for x_ref in x_refs:            # static Python loop -> static column offsets
        f = x_ref.shape[-1]
        o_ref[:, off:off + f] = x_ref[...]
        off += f


def _choose_row_tile(n_rows, f_total, itemsize, vmem_budget_bytes=8 << 20):
    """Largest row tile whose double-buffered in+out footprint fits the budget."""
    per_row = 4 * f_total * itemsize          # 2 bufs * (inputs + output) per row
    tn = vmem_budget_bytes // max(per_row, 1)
    tn = min(tn, 2048)                        # >~1-2K rows: flat on the HBM roofline
    tn = max(8, (tn // 8) * 8)                # sublane multiple
    if tn >= n_rows:
        return n_rows                         # full extent is always a legal block dim
    return tn


def jumping_knowledge(xs, mode, *, min_bytes_for_pallas=256 << 10):
    """JumpingKnowledge forward. xs: list/tuple of (N, F_l) arrays (same N, same dtype)."""
    assert isinstance(xs, (list, tuple)) and len(xs) > 0
    mode = mode.lower()
    if mode == 'last':
        return xs[-1]

    # 'cat' (and any non-'last' mode, exactly like the PyTorch reference).
    n = xs[0].shape[0]
    dtype = xs[0].dtype
    assert all(x.ndim == 2 and x.shape[0] == n and x.dtype == dtype for x in xs), \
        "cat along dim=-1 requires equal leading dim and dtype"
    feats = [x.shape[1] for x in xs]
    f_total = sum(feats)
    itemsize = jnp.dtype(dtype).itemsize

    # Tiny inputs: pallas_call fixed cost + ~0.35us/step dominates; native concat wins.
    if n * f_total * itemsize < min_bytes_for_pallas:
        return jnp.concatenate(xs, axis=-1)

    tn = _choose_row_tile(n, f_total, itemsize)
    grid = (pl.cdiv(n, tn),)

    in_specs = [pl.BlockSpec((tn, f), lambda i: (i, 0)) for f in feats]
    out_specs = pl.BlockSpec((tn, f_total), lambda i: (i, 0))

    return pl.pallas_call(
        _cat_kernel,
        out_shape=jax.ShapeDtypeStruct((n, f_total), dtype),
        grid=grid,
        in_specs=in_specs,
        out_specs=out_specs,
        compiler_params=pltpu.CompilerParams(dimension_semantics=("parallel",)),
    )(*xs)


if __name__ == "__main__":
    # JumpingKnowledge has no parameters, so there is nothing to initialize.
    key = jax.random.PRNGKey(0)

    # --- Main test: large enough N to go through the Pallas kernel -------------
    L, N, F = 3, 2048, 128  # 3 GNN layers, 2048 nodes, 128 hidden features
    keys = jax.random.split(key, L)
    xs = [jax.random.normal(k, (N, F), dtype=jnp.float32) for k in keys]

    out_cat = jax.block_until_ready(jumping_knowledge(xs, "cat"))
    ref_cat = jnp.concatenate(xs, axis=-1)
    assert out_cat.shape == (N, L * F)
    assert jnp.allclose(out_cat, ref_cat), "cat mismatch"

    # --- Differing per-layer feature widths (torch.cat allows this) ------------
    k1, k2 = jax.random.split(jax.random.PRNGKey(1))
    xs_var = [jax.random.normal(k1, (N, 128), dtype=jnp.float32),
              jax.random.normal(k2, (N, 256), dtype=jnp.float32)]
    out_var = jax.block_until_ready(jumping_knowledge(xs_var, "cat"))
    assert out_var.shape == (N, 384)
    assert jnp.allclose(out_var, jnp.concatenate(xs_var, axis=-1)), "var-F cat mismatch"

    # --- mode='last' passthrough ------------------------------------------------
    out_last = jax.block_until_ready(jumping_knowledge(xs, "last"))
    assert out_last.shape == (N, F)
    assert jnp.allclose(out_last, xs[-1]), "last mismatch"

    # --- Tiny input: takes the jnp.concatenate fallback path --------------------
    xs_small = [jax.random.normal(k, (16, 32), dtype=jnp.float32)
                for k in jax.random.split(jax.random.PRNGKey(2), 3)]
    out_small = jax.block_until_ready(jumping_knowledge(xs_small, "cat"))
    assert jnp.allclose(out_small, jnp.concatenate(xs_small, axis=-1)), "small cat mismatch"

    print("KERNEL_OK")
</pallas_src>

<mosaic_0001>
module attributes {stable_mosaic.version = 11 : i64} {
  func.func @_cat_kernel(%arg0: i32, %arg1: memref<1360x128xf32, #tpu.memory_space<vmem>>, %arg2: memref<1360x128xf32, #tpu.memory_space<vmem>>, %arg3: memref<1360x128xf32, #tpu.memory_space<vmem>>, %arg4: memref<1360x384xf32, #tpu.memory_space<vmem>>) attributes {dimension_semantics = [#tpu.dimension_semantics<parallel>], iteration_bounds = array<i64: 2>, scalar_prefetch = 0 : i64, scratch_operands = 0 : i64, tpu.core_type = #tpu.core_type<tc>, window_params = [{transform_indices = @transform_0, window_bounds = array<i64: 1360, 128>}, {transform_indices = @transform_1, window_bounds = array<i64: 1360, 128>}, {transform_indices = @transform_2, window_bounds = array<i64: 1360, 128>}, {transform_indices = @transform_3, window_bounds = array<i64: 1360, 384>}]} {
    %c0 = arith.constant 0 : index
    %c0_0 = arith.constant 0 : index
    %0 = vector.load %arg1[%c0, %c0_0] : memref<1360x128xf32, #tpu.memory_space<vmem>>, vector<1360x128xf32>
    %c0_1 = arith.constant 0 : index
    %c0_2 = arith.constant 0 : index
    %1 = vector.load %arg4[%c0_1, %c0_2] : memref<1360x384xf32, #tpu.memory_space<vmem>>, vector<1360x128xf32>
    tpu.vector_store %arg4[%c0_1, %c0_2], %0 {strides = array<i32>} : memref<1360x384xf32, #tpu.memory_space<vmem>>, vector<1360x128xf32>,
    %c0_3 = arith.constant 0 : index
    %c0_4 = arith.constant 0 : index
    %2 = vector.load %arg2[%c0_3, %c0_4] : memref<1360x128xf32, #tpu.memory_space<vmem>>, vector<1360x128xf32>
    %c0_5 = arith.constant 0 : index
    %c128 = arith.constant 128 : index
    %3 = vector.load %arg4[%c0_5, %c128] : memref<1360x384xf32, #tpu.memory_space<vmem>>, vector<1360x128xf32>
    tpu.vector_store %arg4[%c0_5, %c128], %2 {strides = array<i32>} : memref<1360x384xf32, #tpu.memory_space<vmem>>, vector<1360x128xf32>,
    %c0_6 = arith.constant 0 : index
    %c0_7 = arith.constant 0 : index
    %4 = vector.load %arg3[%c0_6, %c0_7] : memref<1360x128xf32, #tpu.memory_space<vmem>>, vector<1360x128xf32>
    %c0_8 = arith.constant 0 : index
    %c256 = arith.constant 256 : index
    %5 = vector.load %arg4[%c0_8, %c256] : memref<1360x384xf32, #tpu.memory_space<vmem>>, vector<1360x128xf32>
    tpu.vector_store %arg4[%c0_8, %c256], %4 {strides = array<i32>} : memref<1360x384xf32, #tpu.memory_space<vmem>>, vector<1360x128xf32>,
    return
  }
  func.func @transform_0(%arg0: i32) -> (i32, i32) {
    %c0_i32 = arith.constant 0 : i32
    %c0_i32_0 = arith.constant 0 : i32
    return %arg0, %c0_i32 : i32, i32
  }
  func.func @transform_1(%arg0: i32) -> (i32, i32) {
    %c0_i32 = arith.constant 0 : i32
    %c0_i32_0 = arith.constant 0 : i32
    return %arg0, %c0_i32 : i32, i32
  }
  func.func @transform_2(%arg0: i32) -> (i32, i32) {
    %c0_i32 = arith.constant 0 : i32
    %c0_i32_0 = arith.constant 0 : i32
    return %arg0, %c0_i32 : i32, i32
  }
  func.func @transform_3(%arg0: i32) -> (i32, i32) {
    %c0_i32 = arith.constant 0 : i32
    %c0_i32_0 = arith.constant 0 : i32
    return %arg0, %c0_i32 : i32, i32
  }
}

</mosaic_0001>

<bundles_post_ra>
// kernel: tpu_custom_call.1
= control target key start
LH: loop header
LB: loop body
LE: loop exit
PB: predicated region body
PF: predicated region fallthrough
CT: control target
= control target key end

     0   :  { %8 = vsyncpa [#allocation3], 0  ;;  %s3042_s0 = inlined_call_operand.hbm [shape: f32[2048,128], index: 0, kind: input, shape index: {}]   ;;  %s3043_s1 = inlined_call_operand.hbm [shape: f32[2048,128], index: 1, kind: input, shape index: {}]   ;;  %s3044_s2 = inlined_call_operand.hbm [shape: f32[2048,128], index: 2, kind: input, shape index: {}]   ;;  %s3045_s3 = inlined_call_operand.hbm [shape: f32[2048,384], index: 3, kind: output, shape index: {}]  }
   0x1   :  { %10 = vsyncpa [#allocation3 + $0x1], 0 }
   0x2   :  { %11 = vsyncpa [#allocation6], 0 }
   0x3   :  { %13 = vsyncpa [#allocation6 + $0x1], 0 }
   0x4   :  { %14 = vsyncpa [#allocation4], 0 }
   0x5   :  { %16 = vsyncpa [#allocation4 + $0x1], 0  ;;  %s1736_s12 = smov 0   ;;  %s1738_s13 = smov 0  }
   0x6   :  { %s1740_s14 = smov 0   ;;  %s1742_s15 = smov 0  }
   0x7 LB: > { %s1757_s16 = sadd.s32 4294967295, %s1702_s15   ;;  %s1463_s17 = sadd.s32 4294967294, %s1702_s15   ;;  %s1702_s15 = sphi %s1742_s15, %s3057_s15   ;;  %s1698_s14 = sphi %s1740_s14, %s3056_s14   ;;  %s1694_s13 = sphi %s1738_s13, %s3055_s13   ;;  %s1690_s12 = sphi %s1736_s12, %s3054_s12  }
   0x8   : > { %s1761_s18 = sadd.s32 1, %s1702_s15   ;;  %s29_s19 = sadd.s32 1, %s1698_s14 }
   0x9   : > { %s26_s20 = ssub.s32 %s1702_s15, %s1761_s18  ;;  %p36_p0 = scmp.ne.s32.totalorder %s1698_s14, %s1694_s13 }
   0xa   : > { %p27_p1 = scmp.eq.s32.totalorder %s26_s20, 0  ;;  %p37_p2 = scmp.eq.s32.totalorder %s1702_s15, 0 }
   0xb   : > { %p42_p3 = scmp.ne.s32.totalorder %s1694_s13, %s1690_s12  ;;  %p43_p4 = scmp.eq.s32.totalorder %s1757_s16, 0 }
   0xc   : > { %s1773_s21 = scalar_select %p27_p1, %s1698_s14, %s29_s19  }
   0xd   : > { %p1775_p5 = por %p37_p2, %p36_p0  ;;  %p1779_p6 = por %p43_p4, %p42_p3 }
   0xe   : > { %p118_p7 = scmp.eq.s32.totalorder %s1757_s16, 1  ;;  %p124_p8 = scmp.eq.s32.totalorder %s1463_s17, 1 }
   0xf   : > { %p3046_p11 = scmp.ge.s32.totalorder %s1702_s15, 2 }
  0x10   : > { %p1784_p9 = por %p118_p7, %p36_p0  ;;  %p1788_p10 = por %p124_p8, %p42_p3 }
  0x11   : > { %140 = sbr.rel (%p3046_p11) target bundleno = 129 (0x81), region = 16 }
  0x12   : > { %s3049_s24 = scalar_select %p1784_p9, 1, 0 }
  0x13   : > { %s3050_s25 = scalar_select %p1788_p10, 1, 0 }
  0x18   : > { %143 = sbr.rel (!%p1775_p5) target bundleno = 59 (0x3b), region = 20  ;;  %s144_s26 = sand.u32 (%p1775_p5), 1, %s1698_s14  }
  0x19   : > { %s149_s27 = smul.u32 (%p1775_p5), 170, %s1702_s15  ;;  %s1802_s5 = scalar_lea.sflag (%p1775_p5), [#allocation3], %s144_s26 }
  0x1a   : > { %s1492_s28 = smul.u32 (%p1775_p5), 1360, %s144_s26 }
  0x1b   : > { %s150_s29 = ssub.s32 (%p1775_p5), 256, %s149_s27 }
  0x1c   : > { %p151_p12 = scmp.lt.s32.totalorder (%p1775_p5), %s150_s29, 170  ;;  %s148_s6 = scalar_lea.vmem (%p1775_p5), [#allocation2], %s1492_s28 }
  0x1f   : > { %s3059_s29 = smov (!%p151_p12, %s150_s29), 170 }
  0x20   : > { %s1799_s30 = sshll.u32 %s3059_s29, 7 }
  0x21   : > { %s155_s4 = ssub.s32 21760, %s1799_s30 }
  0x22   : > { %156 = vsyncadd %s1802_s5, %s155_s4  ;;  %p1467_p13 = scmp.ne.s32.totalorder %s1799_s30, 0  ;;  %s1489_s7 = smul.u32 21760, %s1702_s15 }
  0x23   : > { %s161_s8 = sshll.u32 %s148_s6, 4  ;;  %s1552_s26 = scalar_lea.hbm %s3042_s0, 32768  ;;  %s1812_s8 = int_to_ptr.vmem [resolvable:$true] %s161_s8 }
  0x24   : > { %s1810_s11 = scalar_lea.hbm %s3042_s0, %s1489_s7 }
  0x25   : > { %s1548_s17 = scalar_lea.hbm %s1810_s11, %s1799_s30  ;;  %p1553_p3 = scmp.lt.u32.totalorder %s1810_s11, %s3042_s0 }
  0x26   : > { %p1549_p0 = scmp.ne.s32.totalorder %s1810_s11, %s1548_s17  ;;  %p1554_p4 = scmp.lt.u32.totalorder %s1552_s26, %s1548_s17 }
  0x27   : > { %p1556_p8 = scmp.lt.u32.totalorder %s1548_s17, %s1810_s11 }
  0x28   : > { %p1550_p1 = pnand %p1549_p0, %p1467_p13  ;;  %p1555_p7 = por %p1554_p4, %p1553_p3 }
  0x2a   : > { %p1551_p2 = pneg %p1550_p1  ;;  %p1557_p12 = por %p1556_p8, %p1555_p7 }
  0x2c   : > { %p1558_p11 = pnand %p1557_p12, %p1551_p2 }
  0x2e   : > { %1561 = shalt.err (!%p1558_p11)
}
  0x2f   : > { %s1562_s29 = scalar_lea.vmem %s1812_s8, %s1799_s30  ;;  %s1704_s4 = smov [#allocation2]  }
  0x30   : > { %p1563_p0 = scmp.ne.s32.totalorder %s1812_s8, %s1562_s29  ;;  %s1566_s6 = sshll.u32 %s1704_s4, 4  ;;  %s1567_s6 = int_to_ptr.vmem [resolvable:$false] %s1566_s6 }
  0x31   : > { %s1568_s7 = scalar_lea.vmem %s1567_s6, 43520  ;;  %p1569_p9 = scmp.lt.s32.totalorder %s1812_s8, %s1567_s6 }
  0x32   : > { %p1564_p1 = pnand %p1563_p0, %p1467_p13  ;;  %p1570_p3 = scmp.lt.s32.totalorder %s1568_s7, %s1562_s29 }
  0x34   : > { %p1565_p10 = pneg %p1564_p1  ;;  %p1571_p4 = por %p1570_p3, %p1569_p9 }
  0x36   : > { %p1572_p7 = pnand %p1571_p4, %p1565_p10 }
  0x38   : > { %1575 = shalt.err (!%p1572_p7)
}
  0x39   : > { %s1705_s9 = smov 128   ;;  %s1706_s10 = smov 8  }
  0x3a   : > { %167 = dma.hbm_to_vmem [thread:$0]  (%p1467_p13), %s1810_s11, %s1799_s30, %s1812_s8, %s1802_s5, %s1705_s9, %s1705_s9, %s1706_s10  }
  0x3b PF: > { %170 = sbr.rel (!%p1775_p5) target bundleno = 94 (0x5e), region = 24  ;;  %s171_s17 = sand.u32 (%p1775_p5), 1, %s1702_s15  }
  0x3c   : > { %s173_s19 = sand.u32 (%p1775_p5), 1, %s1698_s14   ;;  %s176_s26 = smul.u32 (%p1775_p5), 170, %s1702_s15 }
  0x3d   : > { %s1493_s20 = smul.u32 (%p1775_p5), 1360, %s173_s19  ;;  %s1847_s4 = scalar_lea.sflag (%p1775_p5), [#allocation6], %s171_s17 }
  0x3e   : > { %s177_s27 = ssub.s32 (%p1775_p5), 256, %s176_s26 }
  0x3f   : > { %p178_p9 = scmp.lt.s32.totalorder (%p1775_p5), %s177_s27, 170  ;;  %s175_s30 = scalar_lea.vmem (%p1775_p5), [#allocation5], %s1493_s20 }
  0x42   : > { %s3061_s27 = smov (!%p178_p9, %s177_s27), 170 }
  0x43   : > { %s1844_s28 = sshll.u32 %s3061_s27, 7 }
  0x44   : > { %s182_s29 = ssub.s32 21760, %s1844_s28 }
  0x45   : > { %183 = vsyncadd %s1847_s4, %s182_s29  ;;  %p1472_p10 = scmp.ne.s32.totalorder %s1844_s28, 0  ;;  %s1490_s5 = smul.u32 21760, %s1702_s15 }
  0x46   : > { %s188_s8 = sshll.u32 %s175_s30, 4  ;;  %s1580_s19 = scalar_lea.hbm %s3043_s1, 32768  ;;  %s1857_s8 = int_to_ptr.vmem [resolvable:$true] %s188_s8 }
  0x47   : > { %s1855_s7 = scalar_lea.hbm %s3043_s1, %s1490_s5 }
  0x48   : > { %s1576_s9 = scalar_lea.hbm %s1855_s7, %s1844_s28  ;;  %p1581_p8 = scmp.lt.u32.totalorder %s1855_s7, %s3043_s1 }
  0x49   : > { %p1577_p11 = scmp.ne.s32.totalorder %s1855_s7, %s1576_s9  ;;  %p1582_p12 = scmp.lt.u32.totalorder %s1580_s19, %s1576_s9 }
  0x4a   : > { %p1584_p1 = scmp.lt.u32.totalorder %s1576_s9, %s1855_s7 }
  0x4b   : > { %p1578_p13 = pnand %p1577_p11, %p1472_p10  ;;  %p1583_p0 = por %p1582_p12, %p1581_p8 }
  0x4d   : > { %p1579_p2 = pneg %p1578_p13  ;;  %p1585_p3 = por %p1584_p1, %p1583_p0 }
  0x4f   : > { %p1586_p4 = pnand %p1585_p3, %p1579_p2 }
  0x51   : > { %1589 = shalt.err (!%p1586_p4)
}
  0x52   : > { %s1590_s27 = scalar_lea.vmem %s1857_s8, %s1844_s28  ;;  %s1707_s29 = smov [#allocation5]  }
  0x53   : > { %p1591_p7 = scmp.ne.s32.totalorder %s1857_s8, %s1590_s27  ;;  %s1594_s30 = sshll.u32 %s1707_s29, 4  ;;  %s1595_s30 = int_to_ptr.vmem [resolvable:$false] %s1594_s30 }
  0x54   : > { %s1596_s5 = scalar_lea.vmem %s1595_s30, 43520  ;;  %p1597_p13 = scmp.lt.s32.totalorder %s1857_s8, %s1595_s30 }
  0x55   : > { %p1592_p9 = pnand %p1591_p7, %p1472_p10  ;;  %p1598_p8 = scmp.lt.s32.totalorder %s1596_s5, %s1590_s27 }
  0x57   : > { %p1593_p11 = pneg %p1592_p9  ;;  %p1599_p12 = por %p1598_p8, %p1597_p13 }
  0x59   : > { %p1600_p0 = pnand %p1599_p12, %p1593_p11 }
  0x5b   : > { %1603 = shalt.err (!%p1600_p0)
}
  0x5c   : > { %s1708_s11 = smov 128   ;;  %s1709_s6 = smov 8  }
  0x5d   : > { %194 = dma.hbm_to_vmem [thread:$0]  (%p1472_p10), %s1855_s7, %s1844_s28, %s1857_s8, %s1847_s4, %s1708_s11, %s1708_s11, %s1709_s6  }
  0x5e PF: > { %197 = sbr.rel (!%p1775_p5) target bundleno = 129 (0x81), region = 28  ;;  %s198_s9 = sand.u32 (%p1775_p5), 1, %s1702_s15  }
  0x5f   : > { %s200_s10 = sand.u32 (%p1775_p5), 1, %s1698_s14   ;;  %s203_s19 = smul.u32 (%p1775_p5), 170, %s1702_s15 }
  0x60   : > { %s1494_s17 = smul.u32 (%p1775_p5), 1360, %s200_s10  ;;  %s1892_s29 = scalar_lea.sflag (%p1775_p5), [#allocation6], %s198_s9 }
  0x61   : > { %s204_s20 = ssub.s32 (%p1775_p5), 256, %s203_s19 }
  0x62   : > { %p205_p2 = scmp.lt.s32.totalorder (%p1775_p5), %s204_s20, 170  ;;  %s202_s28 = scalar_lea.vmem (%p1775_p5), [#allocation7], %s1494_s17 }
  0x65   : > { %s3063_s20 = smov (!%p205_p2, %s204_s20), 170 }
  0x66   : > { %s1889_s26 = sshll.u32 %s3063_s20, 7 }
  0x67   : > { %s209_s27 = ssub.s32 21760, %s1889_s26 }
  0x68   : > { %210 = vsyncadd %s1892_s29, %s209_s27  ;;  %p1477_p5 = scmp.ne.s32.totalorder %s1889_s26, 0  ;;  %s1491_s22 = smul.u32 21760, %s1702_s15 }
  0x69   : > { %s215_s4 = sshll.u32 %s202_s28, 4  ;;  %s1608_s9 = scalar_lea.hbm %s3044_s2, 32768  ;;  %s1902_s4 = int_to_ptr.vmem [resolvable:$true] %s215_s4 }
  0x6a   : > { %s1900_s30 = scalar_lea.hbm %s3044_s2, %s1491_s22 }
  0x6b   : > { %s1604_s5 = scalar_lea.hbm %s1900_s30, %s1889_s26  ;;  %p1609_p4 = scmp.lt.u32.totalorder %s1900_s30, %s3044_s2 }
  0x6c   : > { %p1605_p10 = scmp.ne.s32.totalorder %s1900_s30, %s1604_s5  ;;  %p1610_p7 = scmp.lt.u32.totalorder %s1608_s9, %s1604_s5 }
  0x6d   : > { %p1612_p11 = scmp.lt.u32.totalorder %s1604_s5, %s1900_s30 }
  0x6e   : > { %p1606_p1 = pnand %p1605_p10, %p1477_p5  ;;  %p1611_p9 = por %p1610_p7, %p1609_p4 }
  0x70   : > { %p1607_p3 = pneg %p1606_p1  ;;  %p1613_p13 = por %p1612_p11, %p1611_p9 }
  0x72   : > { %p1614_p8 = pnand %p1613_p13, %p1607_p3 }
  0x74   : > { %1617 = shalt.err (!%p1614_p8)
}
  0x75   : > { %s1618_s19 = scalar_lea.vmem %s1902_s4, %s1889_s26  ;;  %s1710_s20 = smov [#allocation7]  }
  0x76   : > { %p1619_p12 = scmp.ne.s32.totalorder %s1902_s4, %s1618_s19  ;;  %s1622_s27 = sshll.u32 %s1710_s20, 4  ;;  %s1623_s27 = int_to_ptr.vmem [resolvable:$false] %s1622_s27 }
  0x77   : > { %s1624_s28 = scalar_lea.vmem %s1623_s27, 43520  ;;  %p1625_p10 = scmp.lt.s32.totalorder %s1902_s4, %s1623_s27 }
  0x78   : > { %p1620_p0 = pnand %p1619_p12, %p1477_p5  ;;  %p1626_p1 = scmp.lt.s32.totalorder %s1624_s28, %s1618_s19 }
  0x7a   : > { %p1621_p2 = pneg %p1620_p0  ;;  %p1627_p4 = por %p1626_p1, %p1625_p10 }
  0x7c   : > { %p1628_p7 = pnand %p1627_p4, %p1621_p2 }
  0x7e   : > { %1631 = shalt.err (!%p1628_p7)
}
  0x7f   : > { %s1711_s22 = smov 128   ;;  %s1712_s8 = smov 8  }
  0x80   : > { %221 = dma.hbm_to_vmem [thread:$0]  (%p1477_p5), %s1900_s30, %s1889_s26, %s1902_s4, %s1892_s29, %s1711_s22, %s1711_s22, %s1712_s8  }
  0x81 PF: > { %p1481_p3 = scmp.ge.s32.totalorder %s1702_s15, 1  ;;  %p223_p9 = scmp.lt.s32.totalorder %s1702_s15, 3 }
  0x83   : > { %p224_p11 = pnand %p1481_p3, %p223_p9 }
  0x84   : > { %s1932_s7 = sand.u32 (!%p224_p11), 1, %s1694_s13  }
  0x85   : > { %227 = sbr.rel (%p224_p11) target bundleno = 431 (0x1af), region = 32  ;;  %s230_s11 = scalar_lea.sflag (!%p224_p11), [#allocation3], %s1932_s7 }
  0x86   : > { %s1935_s5 = smul.u32 (!%p224_p11), 1360, %s1932_s7 }
  0x88   : > { %s1939_s6 = scalar_lea.vmem (!%p224_p11), [#allocation2], %s1935_s5 }
  0x8c   : > { %1677 = dma.done.wait (%p1779_p6), %s230_s11, 21760  }
  0x8d   : > { %1679 = vsyncadd (%p1779_p6), %s230_s11, 4294945536  ;;  %s238_s26 = sand.u32 1, %s1757_s16   ;;  %s1947_s4 = scalar_lea.vmem [#allocation5], %s1935_s5 }
  0x8e   : > { %s239_s29 = scalar_lea.sflag [#allocation6], %s238_s26 }
  0x8f   : > { %1681 = dma.done.wait (%p1779_p6), %s239_s29, 43520  }
  0x90   : > { %1683 = vsyncadd (%p1779_p6), %s239_s29, 4294923776  ;;  %s1496_s30 = smul.u32 4080, %s1932_s7  ;;  %v305_v0 = vld [vmem:[%s1939_s6] sm:$0xff]  ;;  %v306_v1 = vld [vmem:[%s1939_s6 + $0x8] sm:$0xff]  ;;  %s2636_s23 = scalar_lea.vmem [#allocation7], %s1935_s5 }
  0x91   : > { %v307_v2 = vld [vmem:[%s1939_s6 + $0x10] sm:$0xff]  ;;  %v308_v3 = vld [vmem:[%s1939_s6 + $0x18] sm:$0xff]  ;;  %v309_v4 = vld [vmem:[%s1939_s6 + $0x20] sm:$0xff]  ;;  %s1326_s10 = scalar_lea.sflag [#allocation4], %s1932_s7  ;;  %p3051_p6 = scmp.ne.s32.totalorder %s3049_s24, 0 }
  0x92   : > { %s1957_s9 = scalar_lea.vmem [#allocation8], %s1496_s30  ;;  %v310_v5 = vld [vmem:[%s1939_s6 + $0x28] sm:$0xff]  ;;  %v311_v6 = vld [vmem:[%s1939_s6 + $0x30] sm:$0xff]  ;;  %v312_v7 = vld [vmem:[%s1939_s6 + $0x38] sm:$0xff]  ;;  %s1333_s17 = smul.u32 (%p3051_p6), 170, %s1757_s16 }
  0x93   : > { %475 = vst [vmem:[%s1957_s9] sm:$0xff] %v305_v0  ;;  %476 = vst [vmem:[%s1957_s9 + $0x18] sm:$0xff] %v306_v1  ;;  %v313_v8 = vld [vmem:[%s1939_s6 + $0x40] sm:$0xff]  ;;  %v314_v9 = vld [vmem:[%s1939_s6 + $0x48] sm:$0xff] }
  0x94   : > { %477 = vst [vmem:[%s1957_s9 + $0x30] sm:$0xff] %v307_v2  ;;  %478 = vst [vmem:[%s1957_s9 + $0x48] sm:$0xff] %v308_v3  ;;  %v315_v10 = vld [vmem:[%s1939_s6 + $0x50] sm:$0xff]  ;;  %v316_v11 = vld [vmem:[%s1939_s6 + $0x58] sm:$0xff]  ;;  %s1334_s19 = ssub.s32 (%p3051_p6), 256, %s1333_s17 }
  0x95   : > { %479 = vst [vmem:[%s1957_s9 + $0x60] sm:$0xff] %v309_v4  ;;  %480 = vst [vmem:[%s1957_s9 + $0x78] sm:$0xff] %v310_v5  ;;  %v317_v12 = vld [vmem:[%s1939_s6 + $0x60] sm:$0xff]  ;;  %v318_v13 = vld [vmem:[%s1939_s6 + $0x68] sm:$0xff]  ;;  %p1335_p5 = scmp.lt.s32.totalorder (%p3051_p6), %s1334_s19, 170 }
  0x96   : > { %481 = vst [vmem:[%s1957_s9 + $0x90] sm:$0xff] %v311_v6  ;;  %482 = vst [vmem:[%s1957_s9 + $0xa8] sm:$0xff] %v312_v7  ;;  %v319_v14 = vld [vmem:[%s1939_s6 + $0x70] sm:$0xff]  ;;  %v320_v15 = vld [vmem:[%s1939_s6 + $0x78] sm:$0xff] }
  0x97   : > { %483 = vst [vmem:[%s1957_s9 + $0xc0] sm:$0xff] %v313_v8  ;;  %484 = vst [vmem:[%s1957_s9 + $0xd8] sm:$0xff] %v314_v9  ;;  %v321_v16 = vld [vmem:[%s1939_s6 + $0x80] sm:$0xff]  ;;  %v322_v17 = vld [vmem:[%s1939_s6 + $0x88] sm:$0xff] }
  0x98   : > { %485 = vst [vmem:[%s1957_s9 + $0xf0] sm:$0xff] %v315_v10  ;;  %486 = vst [vmem:[%s1957_s9 + $0x108] sm:$0xff] %v316_v11  ;;  %v323_v18 = vld [vmem:[%s1939_s6 + $0x90] sm:$0xff]  ;;  %v324_v19 = vld [vmem:[%s1939_s6 + $0x98] sm:$0xff] }
  0x99   : > { %487 = vst [vmem:[%s1957_s9 + $0x120] sm:$0xff] %v317_v12  ;;  %488 = vst [vmem:[%s1957_s9 + $0x138] sm:$0xff] %v318_v13  ;;  %v325_v20 = vld [vmem:[%s1939_s6 + $0xa0] sm:$0xff]  ;;  %v326_v21 = vld [vmem:[%s1939_s6 + $0xa8] sm:$0xff] }
  0x9a   : > { %489 = vst [vmem:[%s1957_s9 + $0x150] sm:$0xff] %v319_v14  ;;  %490 = vst [vmem:[%s1957_s9 + $0x168] sm:$0xff] %v320_v15  ;;  %v327_v22 = vld [vmem:[%s1939_s6 + $0xb0] sm:$0xff]  ;;  %v328_v23 = vld [vmem:[%s1939_s6 + $0xb8] sm:$0xff] }
  0x9b   : > { %491 = vst [vmem:[%s1957_s9 + $0x180] sm:$0xff] %v321_v16  ;;  %492 = vst [vmem:[%s1957_s9 + $0x198] sm:$0xff] %v322_v17  ;;  %v329_v24 = vld [vmem:[%s1939_s6 + $0xc0] sm:$0xff]  ;;  %v330_v25 = vld [vmem:[%s1939_s6 + $0xc8] sm:$0xff] }
  0x9c   : > { %493 = vst [vmem:[%s1957_s9 + $0x1b0] sm:$0xff] %v323_v18  ;;  %494 = vst [vmem:[%s1957_s9 + $0x1c8] sm:$0xff] %v324_v19  ;;  %v331_v26 = vld [vmem:[%s1939_s6 + $0xd0] sm:$0xff]  ;;  %v332_v27 = vld [vmem:[%s1939_s6 + $0xd8] sm:$0xff] }
  0x9d   : > { %495 = vst [vmem:[%s1957_s9 + $0x1e0] sm:$0xff] %v325_v20  ;;  %496 = vst [vmem:[%s1957_s9 + $0x1f8] sm:$0xff] %v326_v21  ;;  %v333_v28 = vld [vmem:[%s1939_s6 + $0xe0] sm:$0xff]  ;;  %v334_v29 = vld [vmem:[%s1939_s6 + $0xe8] sm:$0xff] }
  0x9e   : > { %497 = vst [vmem:[%s1957_s9 + $0x210] sm:$0xff] %v327_v22  ;;  %498 = vst [vmem:[%s1957_s9 + $0x228] sm:$0xff] %v328_v23  ;;  %v335_v30 = vld [vmem:[%s1939_s6 + $0xf0] sm:$0xff]  ;;  %v336_v31 = vld [vmem:[%s1939_s6 + $0xf8] sm:$0xff] }
  0x9f   : > { %499 = vst [vmem:[%s1957_s9 + $0x240] sm:$0xff] %v329_v24  ;;  %500 = vst [vmem:[%s1957_s9 + $0x258] sm:$0xff] %v330_v25  ;;  %v337_v32 = vld [vmem:[%s1939_s6 + $0x100] sm:$0xff]  ;;  %v338_v33 = vld [vmem:[%s1939_s6 + $0x108] sm:$0xff] }
  0xa0   : > { %501 = vst [vmem:[%s1957_s9 + $0x270] sm:$0xff] %v331_v26  ;;  %502 = vst [vmem:[%s1957_s9 + $0x288] sm:$0xff] %v332_v27  ;;  %v339_v34 = vld [vmem:[%s1939_s6 + $0x110] sm:$0xff]  ;;  %v340_v35 = vld [vmem:[%s1939_s6 + $0x118] sm:$0xff] }
  0xa1   : > { %503 = vst [vmem:[%s1957_s9 + $0x2a0] sm:$0xff] %v333_v28  ;;  %504 = vst [vmem:[%s1957_s9 + $0x2b8] sm:$0xff] %v334_v29  ;;  %v341_v36 = vld [vmem:[%s1939_s6 + $0x120] sm:$0xff]  ;;  %v342_v37 = vld [vmem:[%s1939_s6 + $0x128] sm:$0xff] }
  0xa2   : > { %505 = vst [vmem:[%s1957_s9 + $0x2d0] sm:$0xff] %v335_v30  ;;  %506 = vst [vmem:[%s1957_s9 + $0x2e8] sm:$0xff] %v336_v31  ;;  %v343_v38 = vld [vmem:[%s1939_s6 + $0x130] sm:$0xff]  ;;  %v344_v39 = vld [vmem:[%s1939_s6 + $0x138] sm:$0xff] }
  0xa3   : > { %507 = vst [vmem:[%s1957_s9 + $0x300] sm:$0xff] %v337_v32  ;;  %508 = vst [vmem:[%s1957_s9 + $0x318] sm:$0xff] %v338_v33  ;;  %v345_v40 = vld [vmem:[%s1939_s6 + $0x140] sm:$0xff]  ;;  %v346_v41 = vld [vmem:[%s1939_s6 + $0x148] sm:$0xff] }
  0xa4   : > { %509 = vst [vmem:[%s1957_s9 + $0x330] sm:$0xff] %v339_v34  ;;  %510 = vst [vmem:[%s1957_s9 + $0x348] sm:$0xff] %v340_v35  ;;  %v347_v42 = vld [vmem:[%s1939_s6 + $0x150] sm:$0xff]  ;;  %v348_v43 = vld [vmem:[%s1939_s6 + $0x158] sm:$0xff] }
  0xa5   : > { %511 = vst [vmem:[%s1957_s9 + $0x360] sm:$0xff] %v341_v36  ;;  %512 = vst [vmem:[%s1957_s9 + $0x378] sm:$0xff] %v342_v37  ;;  %v349_v44 = vld [vmem:[%s1939_s6 + $0x160] sm:$0xff]  ;;  %v350_v45 = vld [vmem:[%s1939_s6 + $0x168] sm:$0xff] }
  0xa6   : > { %513 = vst [vmem:[%s1957_s9 + $0x390] sm:$0xff] %v343_v38  ;;  %514 = vst [vmem:[%s1957_s9 + $0x3a8] sm:$0xff] %v344_v39  ;;  %v351_v46 = vld [vmem:[%s1939_s6 + $0x170] sm:$0xff]  ;;  %v352_v47 = vld [vmem:[%s1939_s6 + $0x178] sm:$0xff] }
  0xa7   : > { %515 = vst [vmem:[%s1957_s9 + $0x3c0] sm:$0xff] %v345_v40  ;;  %516 = vst [vmem:[%s1957_s9 + $0x3d8] sm:$0xff] %v346_v41  ;;  %v353_v48 = vld [vmem:[%s1939_s6 + $0x180] sm:$0xff]  ;;  %v354_v49 = vld [vmem:[%s1939_s6 + $0x188] sm:$0xff] }
  0xa8   : > { %517 = vst [vmem:[%s1957_s9 + $0x3f0] sm:$0xff] %v347_v42  ;;  %518 = vst [vmem:[%s1957_s9 + $0x408] sm:$0xff] %v348_v43  ;;  %v355_v50 = vld [vmem:[%s1939_s6 + $0x190] sm:$0xff]  ;;  %v356_v51 = vld [vmem:[%s1939_s6 + $0x198] sm:$0xff] }
  0xa9   : > { %519 = vst [vmem:[%s1957_s9 + $0x420] sm:$0xff] %v349_v44  ;;  %520 = vst [vmem:[%s1957_s9 + $0x438] sm:$0xff] %v350_v45  ;;  %v357_v52 = vld [vmem:[%s1939_s6 + $0x1a0] sm:$0xff]  ;;  %v358_v53 = vld [vmem:[%s1939_s6 + $0x1a8] sm:$0xff] }
  0xaa   : > { %521 = vst [vmem:[%s1957_s9 + $0x450] sm:$0xff] %v351_v46  ;;  %522 = vst [vmem:[%s1957_s9 + $0x468] sm:$0xff] %v352_v47  ;;  %v359_v54 = vld [vmem:[%s1939_s6 + $0x1b0] sm:$0xff]  ;;  %v360_v55 = vld [vmem:[%s1939_s6 + $0x1b8] sm:$0xff] }
  0xab   : > { %523 = vst [vmem:[%s1957_s9 + $0x480] sm:$0xff] %v353_v48  ;;  %524 = vst [vmem:[%s1957_s9 + $0x498] sm:$0xff] %v354_v49  ;;  %v361_v56 = vld [vmem:[%s1939_s6 + $0x1c0] sm:$0xff]  ;;  %v362_v57 = vld [vmem:[%s1939_s6 + $0x1c8] sm:$0xff] }
  0xac   : > { %525 = vst [vmem:[%s1957_s9 + $0x4b0] sm:$0xff] %v355_v50  ;;  %526 = vst [vmem:[%s1957_s9 + $0x4c8] sm:$0xff] %v356_v51  ;;  %v363_v58 = vld [vmem:[%s1939_s6 + $0x1d0] sm:$0xff]  ;;  %v364_v59 = vld [vmem:[%s1939_s6 + $0x1d8] sm:$0xff] }
  0xad   : > { %527 = vst [vmem:[%s1957_s9 + $0x4e0] sm:$0xff] %v357_v52  ;;  %528 = vst [vmem:[%s1957_s9 + $0x4f8] sm:$0xff] %v358_v53  ;;  %v365_v60 = vld [vmem:[%s1939_s6 + $0x1e0] sm:$0xff]  ;;  %v366_v61 = vld [vmem:[%s1939_s6 + $0x1e8] sm:$0xff] }
  0xae   : > { %529 = vst [vmem:[%s1957_s9 + $0x510] sm:$0xff] %v359_v54  ;;  %530 = vst [vmem:[%s1957_s9 + $0x528] sm:$0xff] %v360_v55  ;;  %v367_v62 = vld [vmem:[%s1939_s6 + $0x1f0] sm:$0xff]  ;;  %v368_v63 = vld [vmem:[%s1939_s6 + $0x1f8] sm:$0xff] }
  0xaf   : > { %531 = vst [vmem:[%s1957_s9 + $0x540] sm:$0xff] %v361_v56  ;;  %532 = vst [vmem:[%s1957_s9 + $0x558] sm:$0xff] %v362_v57  ;;  %v369_v0 = vld [vmem:[%s1939_s6 + $0x200] sm:$0xff]  ;;  %v370_v1 = vld [vmem:[%s1939_s6 + $0x208] sm:$0xff] }
  0xb0   : > { %533 = vst [vmem:[%s1957_s9 + $0x570] sm:$0xff] %v363_v58  ;;  %534 = vst [vmem:[%s1957_s9 + $0x588] sm:$0xff] %v364_v59  ;;  %v371_v2 = vld [vmem:[%s1939_s6 + $0x210] sm:$0xff]  ;;  %v372_v3 = vld [vmem:[%s1939_s6 + $0x218] sm:$0xff] }
  0xb1   : > { %535 = vst [vmem:[%s1957_s9 + $0x5a0] sm:$0xff] %v365_v60  ;;  %536 = vst [vmem:[%s1957_s9 + $0x5b8] sm:$0xff] %v366_v61  ;;  %v373_v4 = vld [vmem:[%s1939_s6 + $0x220] sm:$0xff]  ;;  %v374_v5 = vld [vmem:[%s1939_s6 + $0x228] sm:$0xff] }
  0xb2   : > { %537 = vst [vmem:[%s1957_s9 + $0x5d0] sm:$0xff] %v367_v62  ;;  %538 = vst [vmem:[%s1957_s9 + $0x5e8] sm:$0xff] %v368_v63  ;;  %v375_v6 = vld [vmem:[%s1939_s6 + $0x230] sm:$0xff]  ;;  %v376_v7 = vld [vmem:[%s1939_s6 + $0x238] sm:$0xff] }
  0xb3   : > { %539 = vst [vmem:[%s1957_s9 + $0x600] sm:$0xff] %v369_v0  ;;  %540 = vst [vmem:[%s1957_s9 + $0x618] sm:$0xff] %v370_v1  ;;  %v377_v8 = vld [vmem:[%s1939_s6 + $0x240] sm:$0xff]  ;;  %v378_v9 = vld [vmem:[%s1939_s6 + $0x248] sm:$0xff] }
  0xb4   : > { %541 = vst [vmem:[%s1957_s9 + $0x630] sm:$0xff] %v371_v2  ;;  %542 = vst [vmem:[%s1957_s9 + $0x648] sm:$0xff] %v372_v3  ;;  %v379_v10 = vld [vmem:[%s1939_s6 + $0x250] sm:$0xff]  ;;  %v380_v11 = vld [vmem:[%s1939_s6 + $0x258] sm:$0xff] }
  0xb5   : > { %543 = vst [vmem:[%s1957_s9 + $0x660] sm:$0xff] %v373_v4  ;;  %544 = vst [vmem:[%s1957_s9 + $0x678] sm:$0xff] %v374_v5  ;;  %v381_v12 = vld [vmem:[%s1939_s6 + $0x260] sm:$0xff]  ;;  %v382_v13 = vld [vmem:[%s1939_s6 + $0x268] sm:$0xff] }
  0xb6   : > { %545 = vst [vmem:[%s1957_s9 + $0x690] sm:$0xff] %v375_v6  ;;  %546 = vst [vmem:[%s1957_s9 + $0x6a8] sm:$0xff] %v376_v7  ;;  %v383_v14 = vld [vmem:[%s1939_s6 + $0x270] sm:$0xff]  ;;  %v384_v15 = vld [vmem:[%s1939_s6 + $0x278] sm:$0xff] }
  0xb7   : > { %547 = vst [vmem:[%s1957_s9 + $0x6c0] sm:$0xff] %v377_v8  ;;  %548 = vst [vmem:[%s1957_s9 + $0x6d8] sm:$0xff] %v378_v9  ;;  %v385_v16 = vld [vmem:[%s1939_s6 + $0x280] sm:$0xff]  ;;  %v386_v17 = vld [vmem:[%s1939_s6 + $0x288] sm:$0xff] }
  0xb8   : > { %549 = vst [vmem:[%s1957_s9 + $0x6f0] sm:$0xff] %v379_v10  ;;  %550 = vst [vmem:[%s1957_s9 + $0x708] sm:$0xff] %v380_v11  ;;  %v387_v18 = vld [vmem:[%s1939_s6 + $0x290] sm:$0xff]  ;;  %v388_v19 = vld [vmem:[%s1939_s6 + $0x298] sm:$0xff] }
  0xb9   : > { %551 = vst [vmem:[%s1957_s9 + $0x720] sm:$0xff] %v381_v12  ;;  %552 = vst [vmem:[%s1957_s9 + $0x738] sm:$0xff] %v382_v13  ;;  %v389_v20 = vld [vmem:[%s1939_s6 + $0x2a0] sm:$0xff]  ;;  %v390_v21 = vld [vmem:[%s1939_s6 + $0x2a8] sm:$0xff] }
  0xba   : > { %553 = vst [vmem:[%s1957_s9 + $0x750] sm:$0xff] %v383_v14  ;;  %554 = vst [vmem:[%s1957_s9 + $0x768] sm:$0xff] %v384_v15  ;;  %v391_v22 = vld [vmem:[%s1939_s6 + $0x2b0] sm:$0xff]  ;;  %v392_v23 = vld [vmem:[%s1939_s6 + $0x2b8] sm:$0xff] }
  0xbb   : > { %555 = vst [vmem:[%s1957_s9 + $0x780] sm:$0xff] %v385_v16  ;;  %556 = vst [vmem:[%s1957_s9 + $0x798] sm:$0xff] %v386_v17  ;;  %v393_v24 = vld [vmem:[%s1939_s6 + $0x2c0] sm:$0xff]  ;;  %v394_v25 = vld [vmem:[%s1939_s6 + $0x2c8] sm:$0xff] }
  0xbc   : > { %557 = vst [vmem:[%s1957_s9 + $0x7b0] sm:$0xff] %v387_v18  ;;  %558 = vst [vmem:[%s1957_s9 + $0x7c8] sm:$0xff] %v388_v19  ;;  %v395_v26 = vld [vmem:[%s1939_s6 + $0x2d0] sm:$0xff]  ;;  %v396_v27 = vld [vmem:[%s1939_s6 + $0x2d8] sm:$0xff] }
  0xbd   : > { %559 = vst [vmem:[%s1957_s9 + $0x7e0] sm:$0xff] %v389_v20  ;;  %560 = vst [vmem:[%s1957_s9 + $0x7f8] sm:$0xff] %v390_v21  ;;  %v397_v28 = vld [vmem:[%s1939_s6 + $0x2e0] sm:$0xff]  ;;  %v398_v29 = vld [vmem:[%s1939_s6 + $0x2e8] sm:$0xff] }
  0xbe   : > { %561 = vst [vmem:[%s1957_s9 + $0x810] sm:$0xff] %v391_v22  ;;  %562 = vst [vmem:[%s1957_s9 + $0x828] sm:$0xff] %v392_v23  ;;  %v399_v30 = vld [vmem:[%s1939_s6 + $0x2f0] sm:$0xff]  ;;  %v400_v31 = vld [vmem:[%s1939_s6 + $0x2f8] sm:$0xff] }
  0xbf   : > { %563 = vst [vmem:[%s1957_s9 + $0x840] sm:$0xff] %v393_v24  ;;  %564 = vst [vmem:[%s1957_s9 + $0x858] sm:$0xff] %v394_v25  ;;  %v401_v32 = vld [vmem:[%s1939_s6 + $0x300] sm:$0xff]  ;;  %v402_v33 = vld [vmem:[%s1939_s6 + $0x308] sm:$0xff] }
  0xc0   : > { %565 = vst [vmem:[%s1957_s9 + $0x870] sm:$0xff] %v395_v26  ;;  %566 = vst [vmem:[%s1957_s9 + $0x888] sm:$0xff] %v396_v27  ;;  %v403_v34 = vld [vmem:[%s1939_s6 + $0x310] sm:$0xff]  ;;  %v404_v35 = vld [vmem:[%s1939_s6 + $0x318] sm:$0xff] }
  0xc1   : > { %567 = vst [vmem:[%s1957_s9 + $0x8a0] sm:$0xff] %v397_v28  ;;  %568 = vst [vmem:[%s1957_s9 + $0x8b8] sm:$0xff] %v398_v29  ;;  %v405_v36 = vld [vmem:[%s1939_s6 + $0x320] sm:$0xff]  ;;  %v406_v37 = vld [vmem:[%s1939_s6 + $0x328] sm:$0xff] }
  0xc2   : > { %569 = vst [vmem:[%s1957_s9 + $0x8d0] sm:$0xff] %v399_v30  ;;  %570 = vst [vmem:[%s1957_s9 + $0x8e8] sm:$0xff] %v400_v31  ;;  %v407_v38 = vld [vmem:[%s1939_s6 + $0x330] sm:$0xff]  ;;  %v408_v39 = vld [vmem:[%s1939_s6 + $0x338] sm:$0xff] }
  0xc3   : > { %571 = vst [vmem:[%s1957_s9 + $0x900] sm:$0xff] %v401_v32  ;;  %572 = vst [vmem:[%s1957_s9 + $0x918] sm:$0xff] %v402_v33  ;;  %v409_v40 = vld [vmem:[%s1939_s6 + $0x340] sm:$0xff]  ;;  %v410_v41 = vld [vmem:[%s1939_s6 + $0x348] sm:$0xff] }
  0xc4   : > { %573 = vst [vmem:[%s1957_s9 + $0x930] sm:$0xff] %v403_v34  ;;  %574 = vst [vmem:[%s1957_s9 + $0x948] sm:$0xff] %v404_v35  ;;  %v411_v42 = vld [vmem:[%s1939_s6 + $0x350] sm:$0xff]  ;;  %v412_v43 = vld [vmem:[%s1939_s6 + $0x358] sm:$0xff] }
  0xc5   : > { %575 = vst [vmem:[%s1957_s9 + $0x960] sm:$0xff] %v405_v36  ;;  %576 = vst [vmem:[%s1957_s9 + $0x978] sm:$0xff] %v406_v37  ;;  %v413_v44 = vld [vmem:[%s1939_s6 + $0x360] sm:$0xff]  ;;  %v414_v45 = vld [vmem:[%s1939_s6 + $0x368] sm:$0xff] }
  0xc6   : > { %577 = vst [vmem:[%s1957_s9 + $0x990] sm:$0xff] %v407_v38  ;;  %578 = vst [vmem:[%s1957_s9 + $0x9a8] sm:$0xff] %v408_v39  ;;  %v415_v46 = vld [vmem:[%s1939_s6 + $0x370] sm:$0xff]  ;;  %v416_v47 = vld [vmem:[%s1939_s6 + $0x378] sm:$0xff] }
  0xc7   : > { %579 = vst [vmem:[%s1957_s9 + $0x9c0] sm:$0xff] %v409_v40  ;;  %580 = vst [vmem:[%s1957_s9 + $0x9d8] sm:$0xff] %v410_v41  ;;  %v417_v48 = vld [vmem:[%s1939_s6 + $0x380] sm:$0xff]  ;;  %v418_v49 = vld [vmem:[%s1939_s6 + $0x388] sm:$0xff] }
  0xc8   : > { %581 = vst [vmem:[%s1957_s9 + $0x9f0] sm:$0xff] %v411_v42  ;;  %582 = vst [vmem:[%s1957_s9 + $0xa08] sm:$0xff] %v412_v43  ;;  %v419_v50 = vld [vmem:[%s1939_s6 + $0x390] sm:$0xff]  ;;  %v420_v51 = vld [vmem:[%s1939_s6 + $0x398] sm:$0xff] }
  0xc9   : > { %583 = vst [vmem:[%s1957_s9 + $0xa20] sm:$0xff] %v413_v44  ;;  %584 = vst [vmem:[%s1957_s9 + $0xa38] sm:$0xff] %v414_v45  ;;  %v421_v52 = vld [vmem:[%s1939_s6 + $0x3a0] sm:$0xff]  ;;  %v422_v53 = vld [vmem:[%s1939_s6 + $0x3a8] sm:$0xff] }
  0xca   : > { %585 = vst [vmem:[%s1957_s9 + $0xa50] sm:$0xff] %v415_v46  ;;  %586 = vst [vmem:[%s1957_s9 + $0xa68] sm:$0xff] %v416_v47  ;;  %v423_v54 = vld [vmem:[%s1939_s6 + $0x3b0] sm:$0xff]  ;;  %v424_v55 = vld [vmem:[%s1939_s6 + $0x3b8] sm:$0xff] }
  0xcb   : > { %587 = vst [vmem:[%s1957_s9 + $0xa80] sm:$0xff] %v417_v48  ;;  %588 = vst [vmem:[%s1957_s9 + $0xa98] sm:$0xff] %v418_v49  ;;  %v425_v56 = vld [vmem:[%s1939_s6 + $0x3c0] sm:$0xff]  ;;  %v426_v57 = vld [vmem:[%s1939_s6 + $0x3c8] sm:$0xff] }
  0xcc   : > { %589 = vst [vmem:[%s1957_s9 + $0xab0] sm:$0xff] %v419_v50  ;;  %590 = vst [vmem:[%s1957_s9 + $0xac8] sm:$0xff] %v420_v51  ;;  %v427_v58 = vld [vmem:[%s1939_s6 + $0x3d0] sm:$0xff]  ;;  %v428_v59 = vld [vmem:[%s1939_s6 + $0x3d8] sm:$0xff] }
  0xcd   : > { %591 = vst [vmem:[%s1957_s9 + $0xae0] sm:$0xff] %v421_v52  ;;  %592 = vst [vmem:[%s1957_s9 + $0xaf8] sm:$0xff] %v422_v53  ;;  %v429_v60 = vld [vmem:[%s1939_s6 + $0x3e0] sm:$0xff]  ;;  %v430_v61 = vld [vmem:[%s1939_s6 + $0x3e8] sm:$0xff] }
  0xce   : > { %593 = vst [vmem:[%s1957_s9 + $0xb10] sm:$0xff] %v423_v54  ;;  %594 = vst [vmem:[%s1957_s9 + $0xb28] sm:$0xff] %v424_v55  ;;  %v431_v62 = vld [vmem:[%s1939_s6 + $0x3f0] sm:$0xff]  ;;  %v432_v63 = vld [vmem:[%s1939_s6 + $0x3f8] sm:$0xff] }
  0xcf   : > { %595 = vst [vmem:[%s1957_s9 + $0xb40] sm:$0xff] %v425_v56  ;;  %596 = vst [vmem:[%s1957_s9 + $0xb58] sm:$0xff] %v426_v57  ;;  %v433_v0 = vld [vmem:[%s1939_s6 + $0x400] sm:$0xff]  ;;  %v434_v1 = vld [vmem:[%s1939_s6 + $0x408] sm:$0xff] }
  0xd0   : > { %597 = vst [vmem:[%s1957_s9 + $0xb70] sm:$0xff] %v427_v58  ;;  %598 = vst [vmem:[%s1957_s9 + $0xb88] sm:$0xff] %v428_v59  ;;  %v435_v2 = vld [vmem:[%s1939_s6 + $0x410] sm:$0xff]  ;;  %v436_v3 = vld [vmem:[%s1939_s6 + $0x418] sm:$0xff] }
  0xd1   : > { %599 = vst [vmem:[%s1957_s9 + $0xba0] sm:$0xff] %v429_v60  ;;  %600 = vst [vmem:[%s1957_s9 + $0xbb8] sm:$0xff] %v430_v61  ;;  %v437_v4 = vld [vmem:[%s1939_s6 + $0x420] sm:$0xff]  ;;  %v438_v5 = vld [vmem:[%s1939_s6 + $0x428] sm:$0xff] }
  0xd2   : > { %601 = vst [vmem:[%s1957_s9 + $0xbd0] sm:$0xff] %v431_v62  ;;  %602 = vst [vmem:[%s1957_s9 + $0xbe8] sm:$0xff] %v432_v63  ;;  %v439_v6 = vld [vmem:[%s1939_s6 + $0x430] sm:$0xff]  ;;  %v440_v7 = vld [vmem:[%s1939_s6 + $0x438] sm:$0xff] }
  0xd3   : > { %603 = vst [vmem:[%s1957_s9 + $0xc00] sm:$0xff] %v433_v0  ;;  %604 = vst [vmem:[%s1957_s9 + $0xc18] sm:$0xff] %v434_v1  ;;  %v441_v8 = vld [vmem:[%s1939_s6 + $0x440] sm:$0xff]  ;;  %v442_v9 = vld [vmem:[%s1939_s6 + $0x448] sm:$0xff] }
  0xd4   : > { %605 = vst [vmem:[%s1957_s9 + $0xc30] sm:$0xff] %v435_v2  ;;  %606 = vst [vmem:[%s1957_s9 + $0xc48] sm:$0xff] %v436_v3  ;;  %v443_v10 = vld [vmem:[%s1939_s6 + $0x450] sm:$0xff]  ;;  %v444_v11 = vld [vmem:[%s1939_s6 + $0x458] sm:$0xff] }
  0xd5   : > { %607 = vst [vmem:[%s1957_s9 + $0xc60] sm:$0xff] %v437_v4  ;;  %608 = vst [vmem:[%s1957_s9 + $0xc78] sm:$0xff] %v438_v5  ;;  %v445_v12 = vld [vmem:[%s1939_s6 + $0x460] sm:$0xff]  ;;  %v446_v13 = vld [vmem:[%s1939_s6 + $0x468] sm:$0xff] }
  0xd6   : > { %609 = vst [vmem:[%s1957_s9 + $0xc90] sm:$0xff] %v439_v6  ;;  %610 = vst [vmem:[%s1957_s9 + $0xca8] sm:$0xff] %v440_v7  ;;  %v447_v14 = vld [vmem:[%s1939_s6 + $0x470] sm:$0xff]  ;;  %v448_v15 = vld [vmem:[%s1939_s6 + $0x478] sm:$0xff] }
  0xd7   : > { %611 = vst [vmem:[%s1957_s9 + $0xcc0] sm:$0xff] %v441_v8  ;;  %612 = vst [vmem:[%s1957_s9 + $0xcd8] sm:$0xff] %v442_v9  ;;  %v449_v16 = vld [vmem:[%s1939_s6 + $0x480] sm:$0xff]  ;;  %v450_v17 = vld [vmem:[%s1939_s6 + $0x488] sm:$0xff] }
  0xd8   : > { %613 = vst [vmem:[%s1957_s9 + $0xcf0] sm:$0xff] %v443_v10  ;;  %614 = vst [vmem:[%s1957_s9 + $0xd08] sm:$0xff] %v444_v11  ;;  %v451_v18 = vld [vmem:[%s1939_s6 + $0x490] sm:$0xff]  ;;  %v452_v19 = vld [vmem:[%s1939_s6 + $0x498] sm:$0xff] }
  0xd9   : > { %615 = vst [vmem:[%s1957_s9 + $0xd20] sm:$0xff] %v445_v12  ;;  %616 = vst [vmem:[%s1957_s9 + $0xd38] sm:$0xff] %v446_v13  ;;  %v453_v20 = vld [vmem:[%s1939_s6 + $0x4a0] sm:$0xff]  ;;  %v454_v21 = vld [vmem:[%s1939_s6 + $0x4a8] sm:$0xff] }
  0xda   : > { %617 = vst [vmem:[%s1957_s9 + $0xd50] sm:$0xff] %v447_v14  ;;  %618 = vst [vmem:[%s1957_s9 + $0xd68] sm:$0xff] %v448_v15  ;;  %v455_v22 = vld [vmem:[%s1939_s6 + $0x4b0] sm:$0xff]  ;;  %v456_v23 = vld [vmem:[%s1939_s6 + $0x4b8] sm:$0xff] }
  0xdb   : > { %619 = vst [vmem:[%s1957_s9 + $0xd80] sm:$0xff] %v449_v16  ;;  %620 = vst [vmem:[%s1957_s9 + $0xd98] sm:$0xff] %v450_v17  ;;  %v457_v24 = vld [vmem:[%s1939_s6 + $0x4c0] sm:$0xff]  ;;  %v458_v25 = vld [vmem:[%s1939_s6 + $0x4c8] sm:$0xff] }
  0xdc   : > { %621 = vst [vmem:[%s1957_s9 + $0xdb0] sm:$0xff] %v451_v18  ;;  %622 = vst [vmem:[%s1957_s9 + $0xdc8] sm:$0xff] %v452_v19  ;;  %v459_v26 = vld [vmem:[%s1939_s6 + $0x4d0] sm:$0xff]  ;;  %v460_v27 = vld [vmem:[%s1939_s6 + $0x4d8] sm:$0xff] }
  0xdd   : > { %623 = vst [vmem:[%s1957_s9 + $0xde0] sm:$0xff] %v453_v20  ;;  %624 = vst [vmem:[%s1957_s9 + $0xdf8] sm:$0xff] %v454_v21  ;;  %v461_v28 = vld [vmem:[%s1939_s6 + $0x4e0] sm:$0xff]  ;;  %v462_v29 = vld [vmem:[%s1939_s6 + $0x4e8] sm:$0xff] }
  0xde   : > { %625 = vst [vmem:[%s1957_s9 + $0xe10] sm:$0xff] %v455_v22  ;;  %626 = vst [vmem:[%s1957_s9 + $0xe28] sm:$0xff] %v456_v23  ;;  %v463_v30 = vld [vmem:[%s1939_s6 + $0x4f0] sm:$0xff]  ;;  %v464_v31 = vld [vmem:[%s1939_s6 + $0x4f8] sm:$0xff] }
  0xdf   : > { %627 = vst [vmem:[%s1957_s9 + $0xe40] sm:$0xff] %v457_v24  ;;  %628 = vst [vmem:[%s1957_s9 + $0xe58] sm:$0xff] %v458_v25  ;;  %v465_v32 = vld [vmem:[%s1939_s6 + $0x500] sm:$0xff]  ;;  %v466_v33 = vld [vmem:[%s1939_s6 + $0x508] sm:$0xff] }
  0xe0   : > { %629 = vst [vmem:[%s1957_s9 + $0xe70] sm:$0xff] %v459_v26  ;;  %630 = vst [vmem:[%s1957_s9 + $0xe88] sm:$0xff] %v460_v27  ;;  %v467_v34 = vld [vmem:[%s1939_s6 + $0x510] sm:$0xff]  ;;  %v468_v35 = vld [vmem:[%s1939_s6 + $0x518] sm:$0xff] }
  0xe1   : > { %631 = vst [vmem:[%s1957_s9 + $0xea0] sm:$0xff] %v461_v28  ;;  %632 = vst [vmem:[%s1957_s9 + $0xeb8] sm:$0xff] %v462_v29  ;;  %v469_v36 = vld [vmem:[%s1939_s6 + $0x520] sm:$0xff]  ;;  %v470_v37 = vld [vmem:[%s1939_s6 + $0x528] sm:$0xff] }
  0xe2   : > { %633 = vst [vmem:[%s1957_s9 + $0xed0] sm:$0xff] %v463_v30  ;;  %634 = vst [vmem:[%s1957_s9 + $0xee8] sm:$0xff] %v464_v31  ;;  %v471_v38 = vld [vmem:[%s1939_s6 + $0x530] sm:$0xff]  ;;  %v472_v39 = vld [vmem:[%s1939_s6 + $0x538] sm:$0xff] }
  0xe3   : > { %635 = vst [vmem:[%s1957_s9 + $0xf00] sm:$0xff] %v465_v32  ;;  %636 = vst [vmem:[%s1957_s9 + $0xf18] sm:$0xff] %v466_v33  ;;  %v473_v40 = vld [vmem:[%s1939_s6 + $0x540] sm:$0xff]  ;;  %v474_v41 = vld [vmem:[%s1939_s6 + $0x548] sm:$0xff] }
  0xe4   : > { %637 = vst [vmem:[%s1957_s9 + $0xf30] sm:$0xff] %v467_v34  ;;  %638 = vst [vmem:[%s1957_s9 + $0xf48] sm:$0xff] %v468_v35  ;;  %v645_v42 = vld [vmem:[%s1947_s4] sm:$0xff]  ;;  %v646_v43 = vld [vmem:[%s1947_s4 + $0x8] sm:$0xff] }
  0xe5   : > { %639 = vst [vmem:[%s1957_s9 + $0xf60] sm:$0xff] %v469_v36  ;;  %640 = vst [vmem:[%s1957_s9 + $0xf78] sm:$0xff] %v470_v37  ;;  %v647_v44 = vld [vmem:[%s1947_s4 + $0x10] sm:$0xff]  ;;  %v648_v45 = vld [vmem:[%s1947_s4 + $0x18] sm:$0xff] }
  0xe6   : > { %641 = vst [vmem:[%s1957_s9 + $0xf90] sm:$0xff] %v471_v38  ;;  %642 = vst [vmem:[%s1957_s9 + $0xfa8] sm:$0xff] %v472_v39  ;;  %v649_v46 = vld [vmem:[%s1947_s4 + $0x20] sm:$0xff]  ;;  %v650_v47 = vld [vmem:[%s1947_s4 + $0x28] sm:$0xff] }
  0xe7   : > { %643 = vst [vmem:[%s1957_s9 + $0xfc0] sm:$0xff] %v473_v40  ;;  %644 = vst [vmem:[%s1957_s9 + $0xfd8] sm:$0xff] %v474_v41  ;;  %v651_v48 = vld [vmem:[%s1947_s4 + $0x30] sm:$0xff]  ;;  %v652_v49 = vld [vmem:[%s1947_s4 + $0x38] sm:$0xff] }
  0xe8   : > { %815 = vst [vmem:[%s1957_s9 + $0x8] sm:$0xff] %v645_v42  ;;  %816 = vst [vmem:[%s1957_s9 + $0x20] sm:$0xff] %v646_v43  ;;  %v653_v50 = vld [vmem:[%s1947_s4 + $0x40] sm:$0xff]  ;;  %v654_v51 = vld [vmem:[%s1947_s4 + $0x48] sm:$0xff] }
  0xe9   : > { %817 = vst [vmem:[%s1957_s9 + $0x38] sm:$0xff] %v647_v44  ;;  %818 = vst [vmem:[%s1957_s9 + $0x50] sm:$0xff] %v648_v45  ;;  %v655_v52 = vld [vmem:[%s1947_s4 + $0x50] sm:$0xff]  ;;  %v656_v53 = vld [vmem:[%s1947_s4 + $0x58] sm:$0xff] }
  0xea   : > { %819 = vst [vmem:[%s1957_s9 + $0x68] sm:$0xff] %v649_v46  ;;  %820 = vst [vmem:[%s1957_s9 + $0x80] sm:$0xff] %v650_v47  ;;  %v657_v54 = vld [vmem:[%s1947_s4 + $0x60] sm:$0xff]  ;;  %v658_v55 = vld [vmem:[%s1947_s4 + $0x68] sm:$0xff] }
  0xeb   : > { %821 = vst [vmem:[%s1957_s9 + $0x98] sm:$0xff] %v651_v48  ;;  %822 = vst [vmem:[%s1957_s9 + $0xb0] sm:$0xff] %v652_v49  ;;  %v659_v56 = vld [vmem:[%s1947_s4 + $0x70] sm:$0xff]  ;;  %v660_v57 = vld [vmem:[%s1947_s4 + $0x78] sm:$0xff] }
  0xec   : > { %823 = vst [vmem:[%s1957_s9 + $0xc8] sm:$0xff] %v653_v50  ;;  %824 = vst [vmem:[%s1957_s9 + $0xe0] sm:$0xff] %v654_v51  ;;  %v661_v58 = vld [vmem:[%s1947_s4 + $0x80] sm:$0xff]  ;;  %v662_v59 = vld [vmem:[%s1947_s4 + $0x88] sm:$0xff] }
  0xed   : > { %825 = vst [vmem:[%s1957_s9 + $0xf8] sm:$0xff] %v655_v52  ;;  %826 = vst [vmem:[%s1957_s9 + $0x110] sm:$0xff] %v656_v53  ;;  %v663_v60 = vld [vmem:[%s1947_s4 + $0x90] sm:$0xff]  ;;  %v664_v61 = vld [vmem:[%s1947_s4 + $0x98] sm:$0xff] }
  0xee   : > { %827 = vst [vmem:[%s1957_s9 + $0x128] sm:$0xff] %v657_v54  ;;  %828 = vst [vmem:[%s1957_s9 + $0x140] sm:$0xff] %v658_v55  ;;  %v665_v62 = vld [vmem:[%s1947_s4 + $0xa0] sm:$0xff]  ;;  %v666_v63 = vld [vmem:[%s1947_s4 + $0xa8] sm:$0xff] }
  0xef   : > { %829 = vst [vmem:[%s1957_s9 + $0x158] sm:$0xff] %v659_v56  ;;  %830 = vst [vmem:[%s1957_s9 + $0x170] sm:$0xff] %v660_v57  ;;  %v667_v0 = vld [vmem:[%s1947_s4 + $0xb0] sm:$0xff]  ;;  %v668_v1 = vld [vmem:[%s1947_s4 + $0xb8] sm:$0xff] }
  0xf0   : > { %831 = vst [vmem:[%s1957_s9 + $0x188] sm:$0xff] %v661_v58  ;;  %832 = vst [vmem:[%s1957_s9 + $0x1a0] sm:$0xff] %v662_v59  ;;  %v669_v2 = vld [vmem:[%s1947_s4 + $0xc0] sm:$0xff]  ;;  %v670_v3 = vld [vmem:[%s1947_s4 + $0xc8] sm:$0xff] }
  0xf1   : > { %833 = vst [vmem:[%s1957_s9 + $0x1b8] sm:$0xff] %v663_v60  ;;  %834 = vst [vmem:[%s1957_s9 + $0x1d0] sm:$0xff] %v664_v61  ;;  %v671_v4 = vld [vmem:[%s1947_s4 + $0xd0] sm:$0xff]  ;;  %v672_v5 = vld [vmem:[%s1947_s4 + $0xd8] sm:$0xff] }
  0xf2   : > { %835 = vst [vmem:[%s1957_s9 + $0x1e8] sm:$0xff] %v665_v62  ;;  %836 = vst [vmem:[%s1957_s9 + $0x200] sm:$0xff] %v666_v63  ;;  %v673_v6 = vld [vmem:[%s1947_s4 + $0xe0] sm:$0xff]  ;;  %v674_v7 = vld [vmem:[%s1947_s4 + $0xe8] sm:$0xff] }
  0xf3   : > { %837 = vst [vmem:[%s1957_s9 + $0x218] sm:$0xff] %v667_v0  ;;  %838 = vst [vmem:[%s1957_s9 + $0x230] sm:$0xff] %v668_v1  ;;  %v675_v8 = vld [vmem:[%s1947_s4 + $0xf0] sm:$0xff]  ;;  %v676_v9 = vld [vmem:[%s1947_s4 + $0xf8] sm:$0xff] }
  0xf4   : > { %839 = vst [vmem:[%s1957_s9 + $0x248] sm:$0xff] %v669_v2  ;;  %840 = vst [vmem:[%s1957_s9 + $0x260] sm:$0xff] %v670_v3  ;;  %v677_v10 = vld [vmem:[%s1947_s4 + $0x100] sm:$0xff]  ;;  %v678_v11 = vld [vmem:[%s1947_s4 + $0x108] sm:$0xff] }
  0xf5   : > { %841 = vst [vmem:[%s1957_s9 + $0x278] sm:$0xff] %v671_v4  ;;  %842 = vst [vmem:[%s1957_s9 + $0x290] sm:$0xff] %v672_v5  ;;  %v679_v12 = vld [vmem:[%s1947_s4 + $0x110] sm:$0xff]  ;;  %v680_v13 = vld [vmem:[%s1947_s4 + $0x118] sm:$0xff] }
  0xf6   : > { %843 = vst [vmem:[%s1957_s9 + $0x2a8] sm:$0xff] %v673_v6  ;;  %844 = vst [vmem:[%s1957_s9 + $0x2c0] sm:$0xff] %v674_v7  ;;  %v681_v14 = vld [vmem:[%s1947_s4 + $0x120] sm:$0xff]  ;;  %v682_v15 = vld [vmem:[%s1947_s4 + $0x128] sm:$0xff] }
  0xf7   : > { %845 = vst [vmem:[%s1957_s9 + $0x2d8] sm:$0xff] %v675_v8  ;;  %846 = vst [vmem:[%s1957_s9 + $0x2f0] sm:$0xff] %v676_v9  ;;  %v683_v16 = vld [vmem:[%s1947_s4 + $0x130] sm:$0xff]  ;;  %v684_v17 = vld [vmem:[%s1947_s4 + $0x138] sm:$0xff] }
  0xf8   : > { %847 = vst [vmem:[%s1957_s9 + $0x308] sm:$0xff] %v677_v10  ;;  %848 = vst [vmem:[%s1957_s9 + $0x320] sm:$0xff] %v678_v11  ;;  %v685_v18 = vld [vmem:[%s1947_s4 + $0x140] sm:$0xff]  ;;  %v686_v19 = vld [vmem:[%s1947_s4 + $0x148] sm:$0xff] }
  0xf9   : > { %849 = vst [vmem:[%s1957_s9 + $0x338] sm:$0xff] %v679_v12  ;;  %850 = vst [vmem:[%s1957_s9 + $0x350] sm:$0xff] %v680_v13  ;;  %v687_v20 = vld [vmem:[%s1947_s4 + $0x150] sm:$0xff]  ;;  %v688_v21 = vld [vmem:[%s1947_s4 + $0x158] sm:$0xff] }
  0xfa   : > { %851 = vst [vmem:[%s1957_s9 + $0x368] sm:$0xff] %v681_v14  ;;  %852 = vst [vmem:[%s1957_s9 + $0x380] sm:$0xff] %v682_v15  ;;  %v689_v22 = vld [vmem:[%s1947_s4 + $0x160] sm:$0xff]  ;;  %v690_v23 = vld [vmem:[%s1947_s4 + $0x168] sm:$0xff] }
  0xfb   : > { %853 = vst [vmem:[%s1957_s9 + $0x398] sm:$0xff] %v683_v16  ;;  %854 = vst [vmem:[%s1957_s9 + $0x3b0] sm:$0xff] %v684_v17  ;;  %v691_v24 = vld [vmem:[%s1947_s4 + $0x170] sm:$0xff]  ;;  %v692_v25 = vld [vmem:[%s1947_s4 + $0x178] sm:$0xff] }
  0xfc   : > { %855 = vst [vmem:[%s1957_s9 + $0x3c8] sm:$0xff] %v685_v18  ;;  %856 = vst [vmem:[%s1957_s9 + $0x3e0] sm:$0xff] %v686_v19  ;;  %v693_v26 = vld [vmem:[%s1947_s4 + $0x180] sm:$0xff]  ;;  %v694_v27 = vld [vmem:[%s1947_s4 + $0x188] sm:$0xff] }
  0xfd   : > { %857 = vst [vmem:[%s1957_s9 + $0x3f8] sm:$0xff] %v687_v20  ;;  %858 = vst [vmem:[%s1957_s9 + $0x410] sm:$0xff] %v688_v21  ;;  %v695_v28 = vld [vmem:[%s1947_s4 + $0x190] sm:$0xff]  ;;  %v696_v29 = vld [vmem:[%s1947_s4 + $0x198] sm:$0xff] }
  0xfe   : > { %859 = vst [vmem:[%s1957_s9 + $0x428] sm:$0xff] %v689_v22  ;;  %860 = vst [vmem:[%s1957_s9 + $0x440] sm:$0xff] %v690_v23  ;;  %v697_v30 = vld [vmem:[%s1947_s4 + $0x1a0] sm:$0xff]  ;;  %v698_v31 = vld [vmem:[%s1947_s4 + $0x1a8] sm:$0xff] }
  0xff   : > { %861 = vst [vmem:[%s1957_s9 + $0x458] sm:$0xff] %v691_v24  ;;  %862 = vst [vmem:[%s1957_s9 + $0x470] sm:$0xff] %v692_v25  ;;  %v699_v32 = vld [vmem:[%s1947_s4 + $0x1b0] sm:$0xff]  ;;  %v700_v33 = vld [vmem:[%s1947_s4 + $0x1b8] sm:$0xff] }
 0x100   : > { %863 = vst [vmem:[%s1957_s9 + $0x488] sm:$0xff] %v693_v26  ;;  %864 = vst [vmem:[%s1957_s9 + $0x4a0] sm:$0xff] %v694_v27  ;;  %v701_v34 = vld [vmem:[%s1947_s4 + $0x1c0] sm:$0xff]  ;;  %v702_v35 = vld [vmem:[%s1947_s4 + $0x1c8] sm:$0xff] }
 0x101   : > { %865 = vst [vmem:[%s1957_s9 + $0x4b8] sm:$0xff] %v695_v28  ;;  %866 = vst [vmem:[%s1957_s9 + $0x4d0] sm:$0xff] %v696_v29  ;;  %v703_v36 = vld [vmem:[%s1947_s4 + $0x1d0] sm:$0xff]  ;;  %v704_v37 = vld [vmem:[%s1947_s4 + $0x1d8] sm:$0xff] }
 0x102   : > { %867 = vst [vmem:[%s1957_s9 + $0x4e8] sm:$0xff] %v697_v30  ;;  %868 = vst [vmem:[%s1957_s9 + $0x500] sm:$0xff] %v698_v31  ;;  %v705_v38 = vld [vmem:[%s1947_s4 + $0x1e0] sm:$0xff]  ;;  %v706_v39 = vld [vmem:[%s1947_s4 + $0x1e8] sm:$0xff] }
 0x103   : > { %869 = vst [vmem:[%s1957_s9 + $0x518] sm:$0xff] %v699_v32  ;;  %870 = vst [vmem:[%s1957_s9 + $0x530] sm:$0xff] %v700_v33  ;;  %v707_v40 = vld [vmem:[%s1947_s4 + $0x1f0] sm:$0xff]  ;;  %v708_v41 = vld [vmem:[%s1947_s4 + $0x1f8] sm:$0xff] }
 0x104   : > { %871 = vst [vmem:[%s1957_s9 + $0x548] sm:$0xff] %v701_v34  ;;  %872 = vst [vmem:[%s1957_s9 + $0x560] sm:$0xff] %v702_v35  ;;  %v709_v42 = vld [vmem:[%s1947_s4 + $0x200] sm:$0xff]  ;;  %v710_v43 = vld [vmem:[%s1947_s4 + $0x208] sm:$0xff] }
 0x105   : > { %873 = vst [vmem:[%s1957_s9 + $0x578] sm:$0xff] %v703_v36  ;;  %874 = vst [vmem:[%s1957_s9 + $0x590] sm:$0xff] %v704_v37  ;;  %v711_v44 = vld [vmem:[%s1947_s4 + $0x210] sm:$0xff]  ;;  %v712_v45 = vld [vmem:[%s1947_s4 + $0x218] sm:$0xff] }
 0x106   : > { %875 = vst [vmem:[%s1957_s9 + $0x5a8] sm:$0xff] %v705_v38  ;;  %876 = vst [vmem:[%s1957_s9 + $0x5c0] sm:$0xff] %v706_v39  ;;  %v713_v46 = vld [vmem:[%s1947_s4 + $0x220] sm:$0xff]  ;;  %v714_v47 = vld [vmem:[%s1947_s4 + $0x228] sm:$0xff] }
 0x107   : > { %877 = vst [vmem:[%s1957_s9 + $0x5d8] sm:$0xff] %v707_v40  ;;  %878 = vst [vmem:[%s1957_s9 + $0x5f0] sm:$0xff] %v708_v41  ;;  %v715_v48 = vld [vmem:[%s1947_s4 + $0x230] sm:$0xff]  ;;  %v716_v49 = vld [vmem:[%s1947_s4 + $0x238] sm:$0xff] }
 0x108   : > { %879 = vst [vmem:[%s1957_s9 + $0x608] sm:$0xff] %v709_v42  ;;  %880 = vst [vmem:[%s1957_s9 + $0x620] sm:$0xff] %v710_v43  ;;  %v717_v50 = vld [vmem:[%s1947_s4 + $0x240] sm:$0xff]  ;;  %v718_v51 = vld [vmem:[%s1947_s4 + $0x248] sm:$0xff] }
 0x109   : > { %881 = vst [vmem:[%s1957_s9 + $0x638] sm:$0xff] %v711_v44  ;;  %882 = vst [vmem:[%s1957_s9 + $0x650] sm:$0xff] %v712_v45  ;;  %v719_v52 = vld [vmem:[%s1947_s4 + $0x250] sm:$0xff]  ;;  %v720_v53 = vld [vmem:[%s1947_s4 + $0x258] sm:$0xff] }
 0x10a   : > { %883 = vst [vmem:[%s1957_s9 + $0x668] sm:$0xff] %v713_v46  ;;  %884 = vst [vmem:[%s1957_s9 + $0x680] sm:$0xff] %v714_v47  ;;  %v721_v54 = vld [vmem:[%s1947_s4 + $0x260] sm:$0xff]  ;;  %v722_v55 = vld [vmem:[%s1947_s4 + $0x268] sm:$0xff] }
 0x10b   : > { %885 = vst [vmem:[%s1957_s9 + $0x698] sm:$0xff] %v715_v48  ;;  %886 = vst [vmem:[%s1957_s9 + $0x6b0] sm:$0xff] %v716_v49  ;;  %v723_v56 = vld [vmem:[%s1947_s4 + $0x270] sm:$0xff]  ;;  %v724_v57 = vld [vmem:[%s1947_s4 + $0x278] sm:$0xff] }
 0x10c   : > { %887 = vst [vmem:[%s1957_s9 + $0x6c8] sm:$0xff] %v717_v50  ;;  %888 = vst [vmem:[%s1957_s9 + $0x6e0] sm:$0xff] %v718_v51  ;;  %v725_v58 = vld [vmem:[%s1947_s4 + $0x280] sm:$0xff]  ;;  %v726_v59 = vld [vmem:[%s1947_s4 + $0x288] sm:$0xff] }
 0x10d   : > { %889 = vst [vmem:[%s1957_s9 + $0x6f8] sm:$0xff] %v719_v52  ;;  %890 = vst [vmem:[%s1957_s9 + $0x710] sm:$0xff] %v720_v53  ;;  %v727_v60 = vld [vmem:[%s1947_s4 + $0x290] sm:$0xff]  ;;  %v728_v61 = vld [vmem:[%s1947_s4 + $0x298] sm:$0xff] }
 0x10e   : > { %891 = vst [vmem:[%s1957_s9 + $0x728] sm:$0xff] %v721_v54  ;;  %892 = vst [vmem:[%s1957_s9 + $0x740] sm:$0xff] %v722_v55  ;;  %v729_v62 = vld [vmem:[%s1947_s4 + $0x2a0] sm:$0xff]  ;;  %v730_v63 = vld [vmem:[%s1947_s4 + $0x2a8] sm:$0xff] }
 0x10f   : > { %893 = vst [vmem:[%s1957_s9 + $0x758] sm:$0xff] %v723_v56  ;;  %894 = vst [vmem:[%s1957_s9 + $0x770] sm:$0xff] %v724_v57  ;;  %v731_v0 = vld [vmem:[%s1947_s4 + $0x2b0] sm:$0xff]  ;;  %v732_v1 = vld [vmem:[%s1947_s4 + $0x2b8] sm:$0xff] }
 0x110   : > { %895 = vst [vmem:[%s1957_s9 + $0x788] sm:$0xff] %v725_v58  ;;  %896 = vst [vmem:[%s1957_s9 + $0x7a0] sm:$0xff] %v726_v59  ;;  %v733_v2 = vld [vmem:[%s1947_s4 + $0x2c0] sm:$0xff]  ;;  %v734_v3 = vld [vmem:[%s1947_s4 + $0x2c8] sm:$0xff] }
 0x111   : > { %897 = vst [vmem:[%s1957_s9 + $0x7b8] sm:$0xff] %v727_v60  ;;  %898 = vst [vmem:[%s1957_s9 + $0x7d0] sm:$0xff] %v728_v61  ;;  %v735_v4 = vld [vmem:[%s1947_s4 + $0x2d0] sm:$0xff]  ;;  %v736_v5 = vld [vmem:[%s1947_s4 + $0x2d8] sm:$0xff] }
 0x112   : > { %899 = vst [vmem:[%s1957_s9 + $0x7e8] sm:$0xff] %v729_v62  ;;  %900 = vst [vmem:[%s1957_s9 + $0x800] sm:$0xff] %v730_v63  ;;  %v737_v6 = vld [vmem:[%s1947_s4 + $0x2e0] sm:$0xff]  ;;  %v738_v7 = vld [vmem:[%s1947_s4 + $0x2e8] sm:$0xff] }
 0x113   : > { %901 = vst [vmem:[%s1957_s9 + $0x818] sm:$0xff] %v731_v0  ;;  %902 = vst [vmem:[%s1957_s9 + $0x830] sm:$0xff] %v732_v1  ;;  %v739_v8 = vld [vmem:[%s1947_s4 + $0x2f0] sm:$0xff]  ;;  %v740_v9 = vld [vmem:[%s1947_s4 + $0x2f8] sm:$0xff] }
 0x114   : > { %903 = vst [vmem:[%s1957_s9 + $0x848] sm:$0xff] %v733_v2  ;;  %904 = vst [vmem:[%s1957_s9 + $0x860] sm:$0xff] %v734_v3  ;;  %v741_v10 = vld [vmem:[%s1947_s4 + $0x300] sm:$0xff]  ;;  %v742_v11 = vld [vmem:[%s1947_s4 + $0x308] sm:$0xff] }
 0x115   : > { %905 = vst [vmem:[%s1957_s9 + $0x878] sm:$0xff] %v735_v4  ;;  %906 = vst [vmem:[%s1957_s9 + $0x890] sm:$0xff] %v736_v5  ;;  %v743_v12 = vld [vmem:[%s1947_s4 + $0x310] sm:$0xff]  ;;  %v744_v13 = vld [vmem:[%s1947_s4 + $0x318] sm:$0xff] }
 0x116   : > { %907 = vst [vmem:[%s1957_s9 + $0x8a8] sm:$0xff] %v737_v6  ;;  %908 = vst [vmem:[%s1957_s9 + $0x8c0] sm:$0xff] %v738_v7  ;;  %v745_v14 = vld [vmem:[%s1947_s4 + $0x320] sm:$0xff]  ;;  %v746_v15 = vld [vmem:[%s1947_s4 + $0x328] sm:$0xff] }
 0x117   : > { %909 = vst [vmem:[%s1957_s9 + $0x8d8] sm:$0xff] %v739_v8  ;;  %910 = vst [vmem:[%s1957_s9 + $0x8f0] sm:$0xff] %v740_v9  ;;  %v747_v16 = vld [vmem:[%s1947_s4 + $0x330] sm:$0xff]  ;;  %v748_v17 = vld [vmem:[%s1947_s4 + $0x338] sm:$0xff] }
 0x118   : > { %911 = vst [vmem:[%s1957_s9 + $0x908] sm:$0xff] %v741_v10  ;;  %912 = vst [vmem:[%s1957_s9 + $0x920] sm:$0xff] %v742_v11  ;;  %v749_v18 = vld [vmem:[%s1947_s4 + $0x340] sm:$0xff]  ;;  %v750_v19 = vld [vmem:[%s1947_s4 + $0x348] sm:$0xff] }
 0x119   : > { %913 = vst [vmem:[%s1957_s9 + $0x938] sm:$0xff] %v743_v12  ;;  %914 = vst [vmem:[%s1957_s9 + $0x950] sm:$0xff] %v744_v13  ;;  %v751_v20 = vld [vmem:[%s1947_s4 + $0x350] sm:$0xff]  ;;  %v752_v21 = vld [vmem:[%s1947_s4 + $0x358] sm:$0xff] }
 0x11a   : > { %915 = vst [vmem:[%s1957_s9 + $0x968] sm:$0xff] %v745_v14  ;;  %916 = vst [vmem:[%s1957_s9 + $0x980] sm:$0xff] %v746_v15  ;;  %v753_v22 = vld [vmem:[%s1947_s4 + $0x360] sm:$0xff]  ;;  %v754_v23 = vld [vmem:[%s1947_s4 + $0x368] sm:$0xff] }
 0x11b   : > { %917 = vst [vmem:[%s1957_s9 + $0x998] sm:$0xff] %v747_v16  ;;  %918 = vst [vmem:[%s1957_s9 + $0x9b0] sm:$0xff] %v748_v17  ;;  %v755_v24 = vld [vmem:[%s1947_s4 + $0x370] sm:$0xff]  ;;  %v756_v25 = vld [vmem:[%s1947_s4 + $0x378] sm:$0xff] }
 0x11c   : > { %919 = vst [vmem:[%s1957_s9 + $0x9c8] sm:$0xff] %v749_v18  ;;  %920 = vst [vmem:[%s1957_s9 + $0x9e0] sm:$0xff] %v750_v19  ;;  %v757_v26 = vld [vmem:[%s1947_s4 + $0x380] sm:$0xff]  ;;  %v758_v27 = vld [vmem:[%s1947_s4 + $0x388] sm:$0xff] }
 0x11d   : > { %921 = vst [vmem:[%s1957_s9 + $0x9f8] sm:$0xff] %v751_v20  ;;  %922 = vst [vmem:[%s1957_s9 + $0xa10] sm:$0xff] %v752_v21  ;;  %v759_v28 = vld [vmem:[%s1947_s4 + $0x390] sm:$0xff]  ;;  %v760_v29 = vld [vmem:[%s1947_s4 + $0x398] sm:$0xff] }
 0x11e   : > { %923 = vst [vmem:[%s1957_s9 + $0xa28] sm:$0xff] %v753_v22  ;;  %924 = vst [vmem:[%s1957_s9 + $0xa40] sm:$0xff] %v754_v23  ;;  %v761_v30 = vld [vmem:[%s1947_s4 + $0x3a0] sm:$0xff]  ;;  %v762_v31 = vld [vmem:[%s1947_s4 + $0x3a8] sm:$0xff] }
 0x11f   : > { %925 = vst [vmem:[%s1957_s9 + $0xa58] sm:$0xff] %v755_v24  ;;  %926 = vst [vmem:[%s1957_s9 + $0xa70] sm:$0xff] %v756_v25  ;;  %v763_v32 = vld [vmem:[%s1947_s4 + $0x3b0] sm:$0xff]  ;;  %v764_v33 = vld [vmem:[%s1947_s4 + $0x3b8] sm:$0xff] }
 0x120   : > { %927 = vst [vmem:[%s1957_s9 + $0xa88] sm:$0xff] %v757_v26  ;;  %928 = vst [vmem:[%s1957_s9 + $0xaa0] sm:$0xff] %v758_v27  ;;  %v765_v34 = vld [vmem:[%s1947_s4 + $0x3c0] sm:$0xff]  ;;  %v766_v35 = vld [vmem:[%s1947_s4 + $0x3c8] sm:$0xff] }
 0x121   : > { %929 = vst [vmem:[%s1957_s9 + $0xab8] sm:$0xff] %v759_v28  ;;  %930 = vst [vmem:[%s1957_s9 + $0xad0] sm:$0xff] %v760_v29  ;;  %v767_v36 = vld [vmem:[%s1947_s4 + $0x3d0] sm:$0xff]  ;;  %v768_v37 = vld [vmem:[%s1947_s4 + $0x3d8] sm:$0xff] }
 0x122   : > { %931 = vst [vmem:[%s1957_s9 + $0xae8] sm:$0xff] %v761_v30  ;;  %932 = vst [vmem:[%s1957_s9 + $0xb00] sm:$0xff] %v762_v31  ;;  %v769_v38 = vld [vmem:[%s1947_s4 + $0x3e0] sm:$0xff]  ;;  %v770_v39 = vld [vmem:[%s1947_s4 + $0x3e8] sm:$0xff] }
 0x123   : > { %933 = vst [vmem:[%s1957_s9 + $0xb18] sm:$0xff] %v763_v32  ;;  %934 = vst [vmem:[%s1957_s9 + $0xb30] sm:$0xff] %v764_v33  ;;  %v771_v40 = vld [vmem:[%s1947_s4 + $0x3f0] sm:$0xff]  ;;  %v772_v41 = vld [vmem:[%s1947_s4 + $0x3f8] sm:$0xff] }
 0x124   : > { %935 = vst [vmem:[%s1957_s9 + $0xb48] sm:$0xff] %v765_v34  ;;  %936 = vst [vmem:[%s1957_s9 + $0xb60] sm:$0xff] %v766_v35  ;;  %v773_v42 = vld [vmem:[%s1947_s4 + $0x400] sm:$0xff]  ;;  %v774_v43 = vld [vmem:[%s1947_s4 + $0x408] sm:$0xff] }
 0x125   : > { %937 = vst [vmem:[%s1957_s9 + $0xb78] sm:$0xff] %v767_v36  ;;  %938 = vst [vmem:[%s1957_s9 + $0xb90] sm:$0xff] %v768_v37  ;;  %v775_v44 = vld [vmem:[%s1947_s4 + $0x410] sm:$0xff]  ;;  %v776_v45 = vld [vmem:[%s1947_s4 + $0x418] sm:$0xff] }
 0x126   : > { %939 = vst [vmem:[%s1957_s9 + $0xba8] sm:$0xff] %v769_v38  ;;  %940 = vst [vmem:[%s1957_s9 + $0xbc0] sm:$0xff] %v770_v39  ;;  %v777_v46 = vld [vmem:[%s1947_s4 + $0x420] sm:$0xff]  ;;  %v778_v47 = vld [vmem:[%s1947_s4 + $0x428] sm:$0xff] }
 0x127   : > { %941 = vst [vmem:[%s1957_s9 + $0xbd8] sm:$0xff] %v771_v40  ;;  %942 = vst [vmem:[%s1957_s9 + $0xbf0] sm:$0xff] %v772_v41  ;;  %v779_v48 = vld [vmem:[%s1947_s4 + $0x430] sm:$0xff]  ;;  %v780_v49 = vld [vmem:[%s1947_s4 + $0x438] sm:$0xff] }
 0x128   : > { %943 = vst [vmem:[%s1957_s9 + $0xc08] sm:$0xff] %v773_v42  ;;  %944 = vst [vmem:[%s1957_s9 + $0xc20] sm:$0xff] %v774_v43  ;;  %v781_v50 = vld [vmem:[%s1947_s4 + $0x440] sm:$0xff]  ;;  %v782_v51 = vld [vmem:[%s1947_s4 + $0x448] sm:$0xff] }
 0x129   : > { %945 = vst [vmem:[%s1957_s9 + $0xc38] sm:$0xff] %v775_v44  ;;  %946 = vst [vmem:[%s1957_s9 + $0xc50] sm:$0xff] %v776_v45  ;;  %v783_v52 = vld [vmem:[%s1947_s4 + $0x450] sm:$0xff]  ;;  %v784_v53 = vld [vmem:[%s1947_s4 + $0x458] sm:$0xff] }
 0x12a   : > { %947 = vst [vmem:[%s1957_s9 + $0xc68] sm:$0xff] %v777_v46  ;;  %948 = vst [vmem:[%s1957_s9 + $0xc80] sm:$0xff] %v778_v47  ;;  %v785_v54 = vld [vmem:[%s1947_s4 + $0x460] sm:$0xff]  ;;  %v786_v55 = vld [vmem:[%s1947_s4 + $0x468] sm:$0xff] }
 0x12b   : > { %949 = vst [vmem:[%s1957_s9 + $0xc98] sm:$0xff] %v779_v48  ;;  %950 = vst [vmem:[%s1957_s9 + $0xcb0] sm:$0xff] %v780_v49  ;;  %v787_v56 = vld [vmem:[%s1947_s4 + $0x470] sm:$0xff]  ;;  %v788_v57 = vld [vmem:[%s1947_s4 + $0x478] sm:$0xff] }
 0x12c   : > { %951 = vst [vmem:[%s1957_s9 + $0xcc8] sm:$0xff] %v781_v50  ;;  %952 = vst [vmem:[%s1957_s9 + $0xce0] sm:$0xff] %v782_v51  ;;  %v789_v58 = vld [vmem:[%s1947_s4 + $0x480] sm:$0xff]  ;;  %v790_v59 = vld [vmem:[%s1947_s4 + $0x488] sm:$0xff] }
 0x12d   : > { %953 = vst [vmem:[%s1957_s9 + $0xcf8] sm:$0xff] %v783_v52  ;;  %954 = vst [vmem:[%s1957_s9 + $0xd10] sm:$0xff] %v784_v53  ;;  %v791_v60 = vld [vmem:[%s1947_s4 + $0x490] sm:$0xff]  ;;  %v792_v61 = vld [vmem:[%s1947_s4 + $0x498] sm:$0xff] }
 0x12e   : > { %955 = vst [vmem:[%s1957_s9 + $0xd28] sm:$0xff] %v785_v54  ;;  %956 = vst [vmem:[%s1957_s9 + $0xd40] sm:$0xff] %v786_v55  ;;  %v793_v62 = vld [vmem:[%s1947_s4 + $0x4a0] sm:$0xff]  ;;  %v794_v63 = vld [vmem:[%s1947_s4 + $0x4a8] sm:$0xff] }
 0x12f   : > { %957 = vst [vmem:[%s1957_s9 + $0xd58] sm:$0xff] %v787_v56  ;;  %958 = vst [vmem:[%s1957_s9 + $0xd70] sm:$0xff] %v788_v57  ;;  %v795_v0 = vld [vmem:[%s1947_s4 + $0x4b0] sm:$0xff]  ;;  %v796_v1 = vld [vmem:[%s1947_s4 + $0x4b8] sm:$0xff] }
 0x130   : > { %959 = vst [vmem:[%s1957_s9 + $0xd88] sm:$0xff] %v789_v58  ;;  %960 = vst [vmem:[%s1957_s9 + $0xda0] sm:$0xff] %v790_v59  ;;  %v797_v2 = vld [vmem:[%s1947_s4 + $0x4c0] sm:$0xff]  ;;  %v798_v3 = vld [vmem:[%s1947_s4 + $0x4c8] sm:$0xff] }
 0x131   : > { %961 = vst [vmem:[%s1957_s9 + $0xdb8] sm:$0xff] %v791_v60  ;;  %962 = vst [vmem:[%s1957_s9 + $0xdd0] sm:$0xff] %v792_v61  ;;  %v799_v4 = vld [vmem:[%s1947_s4 + $0x4d0] sm:$0xff]  ;;  %v800_v5 = vld [vmem:[%s1947_s4 + $0x4d8] sm:$0xff] }
 0x132   : > { %963 = vst [vmem:[%s1957_s9 + $0xde8] sm:$0xff] %v793_v62  ;;  %964 = vst [vmem:[%s1957_s9 + $0xe00] sm:$0xff] %v794_v63  ;;  %v801_v6 = vld [vmem:[%s1947_s4 + $0x4e0] sm:$0xff]  ;;  %v802_v7 = vld [vmem:[%s1947_s4 + $0x4e8] sm:$0xff] }
 0x133   : > { %965 = vst [vmem:[%s1957_s9 + $0xe18] sm:$0xff] %v795_v0  ;;  %966 = vst [vmem:[%s1957_s9 + $0xe30] sm:$0xff] %v796_v1  ;;  %v803_v8 = vld [vmem:[%s1947_s4 + $0x4f0] sm:$0xff]  ;;  %v804_v9 = vld [vmem:[%s1947_s4 + $0x4f8] sm:$0xff] }
 0x134   : > { %967 = vst [vmem:[%s1957_s9 + $0xe48] sm:$0xff] %v797_v2  ;;  %968 = vst [vmem:[%s1957_s9 + $0xe60] sm:$0xff] %v798_v3  ;;  %v805_v10 = vld [vmem:[%s1947_s4 + $0x500] sm:$0xff]  ;;  %v806_v11 = vld [vmem:[%s1947_s4 + $0x508] sm:$0xff] }
 0x135   : > { %969 = vst [vmem:[%s1957_s9 + $0xe78] sm:$0xff] %v799_v4  ;;  %970 = vst [vmem:[%s1957_s9 + $0xe90] sm:$0xff] %v800_v5  ;;  %v807_v12 = vld [vmem:[%s1947_s4 + $0x510] sm:$0xff]  ;;  %v808_v13 = vld [vmem:[%s1947_s4 + $0x518] sm:$0xff] }
 0x136   : > { %971 = vst [vmem:[%s1957_s9 + $0xea8] sm:$0xff] %v801_v6  ;;  %972 = vst [vmem:[%s1957_s9 + $0xec0] sm:$0xff] %v802_v7  ;;  %v809_v14 = vld [vmem:[%s1947_s4 + $0x520] sm:$0xff]  ;;  %v810_v15 = vld [vmem:[%s1947_s4 + $0x528] sm:$0xff] }
 0x137   : > { %973 = vst [vmem:[%s1957_s9 + $0xed8] sm:$0xff] %v803_v8  ;;  %974 = vst [vmem:[%s1957_s9 + $0xef0] sm:$0xff] %v804_v9  ;;  %v811_v16 = vld [vmem:[%s1947_s4 + $0x530] sm:$0xff]  ;;  %v812_v17 = vld [vmem:[%s1947_s4 + $0x538] sm:$0xff] }
 0x138   : > { %975 = vst [vmem:[%s1957_s9 + $0xf08] sm:$0xff] %v805_v10  ;;  %976 = vst [vmem:[%s1957_s9 + $0xf20] sm:$0xff] %v806_v11  ;;  %v813_v18 = vld [vmem:[%s1947_s4 + $0x540] sm:$0xff]  ;;  %v814_v19 = vld [vmem:[%s1947_s4 + $0x548] sm:$0xff] }
 0x139   : > { %977 = vst [vmem:[%s1957_s9 + $0xf38] sm:$0xff] %v807_v12  ;;  %978 = vst [vmem:[%s1957_s9 + $0xf50] sm:$0xff] %v808_v13  ;;  %v985_v20 = vld [vmem:[%s2636_s23] sm:$0xff]  ;;  %v986_v21 = vld [vmem:[%s2636_s23 + $0x8] sm:$0xff] }
 0x13a   : > { %979 = vst [vmem:[%s1957_s9 + $0xf68] sm:$0xff] %v809_v14  ;;  %980 = vst [vmem:[%s1957_s9 + $0xf80] sm:$0xff] %v810_v15  ;;  %v987_v22 = vld [vmem:[%s2636_s23 + $0x10] sm:$0xff]  ;;  %v988_v23 = vld [vmem:[%s2636_s23 + $0x18] sm:$0xff] }
 0x13b   : > { %981 = vst [vmem:[%s1957_s9 + $0xf98] sm:$0xff] %v811_v16  ;;  %982 = vst [vmem:[%s1957_s9 + $0xfb0] sm:$0xff] %v812_v17  ;;  %v989_v24 = vld [vmem:[%s2636_s23 + $0x20] sm:$0xff]  ;;  %v990_v25 = vld [vmem:[%s2636_s23 + $0x28] sm:$0xff] }
 0x13c   : > { %983 = vst [vmem:[%s1957_s9 + $0xfc8] sm:$0xff] %v813_v18  ;;  %984 = vst [vmem:[%s1957_s9 + $0xfe0] sm:$0xff] %v814_v19  ;;  %v991_v26 = vld [vmem:[%s2636_s23 + $0x30] sm:$0xff]  ;;  %v992_v27 = vld [vmem:[%s2636_s23 + $0x38] sm:$0xff] }
 0x13d   : > { %1155 = vst [vmem:[%s1957_s9 + $0x10] sm:$0xff] %v985_v20  ;;  %1156 = vst [vmem:[%s1957_s9 + $0x28] sm:$0xff] %v986_v21  ;;  %v993_v28 = vld [vmem:[%s2636_s23 + $0x40] sm:$0xff]  ;;  %v994_v29 = vld [vmem:[%s2636_s23 + $0x48] sm:$0xff] }
 0x13e   : > { %1157 = vst [vmem:[%s1957_s9 + $0x40] sm:$0xff] %v987_v22  ;;  %1158 = vst [vmem:[%s1957_s9 + $0x58] sm:$0xff] %v988_v23  ;;  %v995_v30 = vld [vmem:[%s2636_s23 + $0x50] sm:$0xff]  ;;  %v996_v31 = vld [vmem:[%s2636_s23 + $0x58] sm:$0xff] }
 0x13f   : > { %1159 = vst [vmem:[%s1957_s9 + $0x70] sm:$0xff] %v989_v24  ;;  %1160 = vst [vmem:[%s1957_s9 + $0x88] sm:$0xff] %v990_v25  ;;  %v997_v32 = vld [vmem:[%s2636_s23 + $0x60] sm:$0xff]  ;;  %v998_v33 = vld [vmem:[%s2636_s23 + $0x68] sm:$0xff] }
 0x140   : > { %1161 = vst [vmem:[%s1957_s9 + $0xa0] sm:$0xff] %v991_v26  ;;  %1162 = vst [vmem:[%s1957_s9 + $0xb8] sm:$0xff] %v992_v27  ;;  %v999_v34 = vld [vmem:[%s2636_s23 + $0x70] sm:$0xff]  ;;  %v1000_v35 = vld [vmem:[%s2636_s23 + $0x78] sm:$0xff] }
 0x141   : > { %1163 = vst [vmem:[%s1957_s9 + $0xd0] sm:$0xff] %v993_v28  ;;  %1164 = vst [vmem:[%s1957_s9 + $0xe8] sm:$0xff] %v994_v29  ;;  %v1001_v36 = vld [vmem:[%s2636_s23 + $0x80] sm:$0xff]  ;;  %v1002_v37 = vld [vmem:[%s2636_s23 + $0x88] sm:$0xff] }
 0x142   : > { %1165 = vst [vmem:[%s1957_s9 + $0x100] sm:$0xff] %v995_v30  ;;  %1166 = vst [vmem:[%s1957_s9 + $0x118] sm:$0xff] %v996_v31  ;;  %v1003_v38 = vld [vmem:[%s2636_s23 + $0x90] sm:$0xff]  ;;  %v1004_v39 = vld [vmem:[%s2636_s23 + $0x98] sm:$0xff] }
 0x143   : > { %1167 = vst [vmem:[%s1957_s9 + $0x130] sm:$0xff] %v997_v32  ;;  %1168 = vst [vmem:[%s1957_s9 + $0x148] sm:$0xff] %v998_v33  ;;  %v1005_v40 = vld [vmem:[%s2636_s23 + $0xa0] sm:$0xff]  ;;  %v1006_v41 = vld [vmem:[%s2636_s23 + $0xa8] sm:$0xff] }
 0x144   : > { %1169 = vst [vmem:[%s1957_s9 + $0x160] sm:$0xff] %v999_v34  ;;  %1170 = vst [vmem:[%s1957_s9 + $0x178] sm:$0xff] %v1000_v35  ;;  %v1007_v42 = vld [vmem:[%s2636_s23 + $0xb0] sm:$0xff]  ;;  %v1008_v43 = vld [vmem:[%s2636_s23 + $0xb8] sm:$0xff] }
 0x145   : > { %1171 = vst [vmem:[%s1957_s9 + $0x190] sm:$0xff] %v1001_v36  ;;  %1172 = vst [vmem:[%s1957_s9 + $0x1a8] sm:$0xff] %v1002_v37  ;;  %v1009_v44 = vld [vmem:[%s2636_s23 + $0xc0] sm:$0xff]  ;;  %v1010_v45 = vld [vmem:[%s2636_s23 + $0xc8] sm:$0xff] }
 0x146   : > { %1173 = vst [vmem:[%s1957_s9 + $0x1c0] sm:$0xff] %v1003_v38  ;;  %1174 = vst [vmem:[%s1957_s9 + $0x1d8] sm:$0xff] %v1004_v39  ;;  %v1011_v46 = vld [vmem:[%s2636_s23 + $0xd0] sm:$0xff]  ;;  %v1012_v47 = vld [vmem:[%s2636_s23 + $0xd8] sm:$0xff] }
 0x147   : > { %1175 = vst [vmem:[%s1957_s9 + $0x1f0] sm:$0xff] %v1005_v40  ;;  %1176 = vst [vmem:[%s1957_s9 + $0x208] sm:$0xff] %v1006_v41  ;;  %v1013_v48 = vld [vmem:[%s2636_s23 + $0xe0] sm:$0xff]  ;;  %v1014_v49 = vld [vmem:[%s2636_s23 + $0xe8] sm:$0xff] }
 0x148   : > { %1177 = vst [vmem:[%s1957_s9 + $0x220] sm:$0xff] %v1007_v42  ;;  %1178 = vst [vmem:[%s1957_s9 + $0x238] sm:$0xff] %v1008_v43  ;;  %v1015_v50 = vld [vmem:[%s2636_s23 + $0xf0] sm:$0xff]  ;;  %v1016_v51 = vld [vmem:[%s2636_s23 + $0xf8] sm:$0xff] }
 0x149   : > { %1179 = vst [vmem:[%s1957_s9 + $0x250] sm:$0xff] %v1009_v44  ;;  %1180 = vst [vmem:[%s1957_s9 + $0x268] sm:$0xff] %v1010_v45  ;;  %v1017_v52 = vld [vmem:[%s2636_s23 + $0x100] sm:$0xff]  ;;  %v1018_v53 = vld [vmem:[%s2636_s23 + $0x108] sm:$0xff] }
 0x14a   : > { %1181 = vst [vmem:[%s1957_s9 + $0x280] sm:$0xff] %v1011_v46  ;;  %1182 = vst [vmem:[%s1957_s9 + $0x298] sm:$0xff] %v1012_v47  ;;  %v1019_v54 = vld [vmem:[%s2636_s23 + $0x110] sm:$0xff]  ;;  %v1020_v55 = vld [vmem:[%s2636_s23 + $0x118] sm:$0xff] }
 0x14b   : > { %1183 = vst [vmem:[%s1957_s9 + $0x2b0] sm:$0xff] %v1013_v48  ;;  %1184 = vst [vmem:[%s1957_s9 + $0x2c8] sm:$0xff] %v1014_v49  ;;  %v1021_v56 = vld [vmem:[%s2636_s23 + $0x120] sm:$0xff]  ;;  %v1022_v57 = vld [vmem:[%s2636_s23 + $0x128] sm:$0xff] }
 0x14c   : > { %1185 = vst [vmem:[%s1957_s9 + $0x2e0] sm:$0xff] %v1015_v50  ;;  %1186 = vst [vmem:[%s1957_s9 + $0x2f8] sm:$0xff] %v1016_v51  ;;  %v1023_v58 = vld [vmem:[%s2636_s23 + $0x130] sm:$0xff]  ;;  %v1024_v59 = vld [vmem:[%s2636_s23 + $0x138] sm:$0xff] }
 0x14d   : > { %1187 = vst [vmem:[%s1957_s9 + $0x310] sm:$0xff] %v1017_v52  ;;  %1188 = vst [vmem:[%s1957_s9 + $0x328] sm:$0xff] %v1018_v53  ;;  %v1025_v60 = vld [vmem:[%s2636_s23 + $0x140] sm:$0xff]  ;;  %v1026_v61 = vld [vmem:[%s2636_s23 + $0x148] sm:$0xff] }
 0x14e   : > { %1189 = vst [vmem:[%s1957_s9 + $0x340] sm:$0xff] %v1019_v54  ;;  %1190 = vst [vmem:[%s1957_s9 + $0x358] sm:$0xff] %v1020_v55  ;;  %v1027_v62 = vld [vmem:[%s2636_s23 + $0x150] sm:$0xff]  ;;  %v1028_v63 = vld [vmem:[%s2636_s23 + $0x158] sm:$0xff] }
 0x14f   : > { %1191 = vst [vmem:[%s1957_s9 + $0x370] sm:$0xff] %v1021_v56  ;;  %1192 = vst [vmem:[%s1957_s9 + $0x388] sm:$0xff] %v1022_v57  ;;  %v1029_v0 = vld [vmem:[%s2636_s23 + $0x160] sm:$0xff]  ;;  %v1030_v1 = vld [vmem:[%s2636_s23 + $0x168] sm:$0xff] }
 0x150   : > { %1193 = vst [vmem:[%s1957_s9 + $0x3a0] sm:$0xff] %v1023_v58  ;;  %1194 = vst [vmem:[%s1957_s9 + $0x3b8] sm:$0xff] %v1024_v59  ;;  %v1031_v2 = vld [vmem:[%s2636_s23 + $0x170] sm:$0xff]  ;;  %v1032_v3 = vld [vmem:[%s2636_s23 + $0x178] sm:$0xff] }
 0x151   : > { %1195 = vst [vmem:[%s1957_s9 + $0x3d0] sm:$0xff] %v1025_v60  ;;  %1196 = vst [vmem:[%s1957_s9 + $0x3e8] sm:$0xff] %v1026_v61  ;;  %v1033_v4 = vld [vmem:[%s2636_s23 + $0x180] sm:$0xff]  ;;  %v1034_v5 = vld [vmem:[%s2636_s23 + $0x188] sm:$0xff] }
 0x152   : > { %1197 = vst [vmem:[%s1957_s9 + $0x400] sm:$0xff] %v1027_v62  ;;  %1198 = vst [vmem:[%s1957_s9 + $0x418] sm:$0xff] %v1028_v63  ;;  %v1035_v6 = vld [vmem:[%s2636_s23 + $0x190] sm:$0xff]  ;;  %v1036_v7 = vld [vmem:[%s2636_s23 + $0x198] sm:$0xff] }
 0x153   : > { %1199 = vst [vmem:[%s1957_s9 + $0x430] sm:$0xff] %v1029_v0  ;;  %1200 = vst [vmem:[%s1957_s9 + $0x448] sm:$0xff] %v1030_v1  ;;  %v1037_v8 = vld [vmem:[%s2636_s23 + $0x1a0] sm:$0xff]  ;;  %v1038_v9 = vld [vmem:[%s2636_s23 + $0x1a8] sm:$0xff] }
 0x154   : > { %1201 = vst [vmem:[%s1957_s9 + $0x460] sm:$0xff] %v1031_v2  ;;  %1202 = vst [vmem:[%s1957_s9 + $0x478] sm:$0xff] %v1032_v3  ;;  %v1039_v10 = vld [vmem:[%s2636_s23 + $0x1b0] sm:$0xff]  ;;  %v1040_v11 = vld [vmem:[%s2636_s23 + $0x1b8] sm:$0xff] }
 0x155   : > { %1203 = vst [vmem:[%s1957_s9 + $0x490] sm:$0xff] %v1033_v4  ;;  %1204 = vst [vmem:[%s1957_s9 + $0x4a8] sm:$0xff] %v1034_v5  ;;  %v1041_v12 = vld [vmem:[%s2636_s23 + $0x1c0] sm:$0xff]  ;;  %v1042_v13 = vld [vmem:[%s2636_s23 + $0x1c8] sm:$0xff] }
 0x156   : > { %1205 = vst [vmem:[%s1957_s9 + $0x4c0] sm:$0xff] %v1035_v6  ;;  %1206 = vst [vmem:[%s1957_s9 + $0x4d8] sm:$0xff] %v1036_v7  ;;  %v1043_v14 = vld [vmem:[%s2636_s23 + $0x1d0] sm:$0xff]  ;;  %v1044_v15 = vld [vmem:[%s2636_s23 + $0x1d8] sm:$0xff] }
 0x157   : > { %1207 = vst [vmem:[%s1957_s9 + $0x4f0] sm:$0xff] %v1037_v8  ;;  %1208 = vst [vmem:[%s1957_s9 + $0x508] sm:$0xff] %v1038_v9  ;;  %v1045_v16 = vld [vmem:[%s2636_s23 + $0x1e0] sm:$0xff]  ;;  %v1046_v17 = vld [vmem:[%s2636_s23 + $0x1e8] sm:$0xff] }
 0x158   : > { %1209 = vst [vmem:[%s1957_s9 + $0x520] sm:$0xff] %v1039_v10  ;;  %1210 = vst [vmem:[%s1957_s9 + $0x538] sm:$0xff] %v1040_v11  ;;  %v1047_v18 = vld [vmem:[%s2636_s23 + $0x1f0] sm:$0xff]  ;;  %v1048_v19 = vld [vmem:[%s2636_s23 + $0x1f8] sm:$0xff] }
 0x159   : > { %1211 = vst [vmem:[%s1957_s9 + $0x550] sm:$0xff] %v1041_v12  ;;  %1212 = vst [vmem:[%s1957_s9 + $0x568] sm:$0xff] %v1042_v13  ;;  %v1049_v20 = vld [vmem:[%s2636_s23 + $0x200] sm:$0xff]  ;;  %v1050_v21 = vld [vmem:[%s2636_s23 + $0x208] sm:$0xff] }
 0x15a   : > { %1213 = vst [vmem:[%s1957_s9 + $0x580] sm:$0xff] %v1043_v14  ;;  %1214 = vst [vmem:[%s1957_s9 + $0x598] sm:$0xff] %v1044_v15  ;;  %v1051_v22 = vld [vmem:[%s2636_s23 + $0x210] sm:$0xff]  ;;  %v1052_v23 = vld [vmem:[%s2636_s23 + $0x218] sm:$0xff] }
 0x15b   : > { %1215 = vst [vmem:[%s1957_s9 + $0x5b0] sm:$0xff] %v1045_v16  ;;  %1216 = vst [vmem:[%s1957_s9 + $0x5c8] sm:$0xff] %v1046_v17  ;;  %v1053_v24 = vld [vmem:[%s2636_s23 + $0x220] sm:$0xff]  ;;  %v1054_v25 = vld [vmem:[%s2636_s23 + $0x228] sm:$0xff] }
 0x15c   : > { %1217 = vst [vmem:[%s1957_s9 + $0x5e0] sm:$0xff] %v1047_v18  ;;  %1218 = vst [vmem:[%s1957_s9 + $0x5f8] sm:$0xff] %v1048_v19  ;;  %v1055_v26 = vld [vmem:[%s2636_s23 + $0x230] sm:$0xff]  ;;  %v1056_v27 = vld [vmem:[%s2636_s23 + $0x238] sm:$0xff] }
 0x15d   : > { %1219 = vst [vmem:[%s1957_s9 + $0x610] sm:$0xff] %v1049_v20  ;;  %1220 = vst [vmem:[%s1957_s9 + $0x628] sm:$0xff] %v1050_v21  ;;  %v1057_v28 = vld [vmem:[%s2636_s23 + $0x240] sm:$0xff]  ;;  %v1058_v29 = vld [vmem:[%s2636_s23 + $0x248] sm:$0xff] }
 0x15e   : > { %1221 = vst [vmem:[%s1957_s9 + $0x640] sm:$0xff] %v1051_v22  ;;  %1222 = vst [vmem:[%s1957_s9 + $0x658] sm:$0xff] %v1052_v23  ;;  %v1059_v30 = vld [vmem:[%s2636_s23 + $0x250] sm:$0xff]  ;;  %v1060_v31 = vld [vmem:[%s2636_s23 + $0x258] sm:$0xff] }
 0x15f   : > { %1223 = vst [vmem:[%s1957_s9 + $0x670] sm:$0xff] %v1053_v24  ;;  %1224 = vst [vmem:[%s1957_s9 + $0x688] sm:$0xff] %v1054_v25  ;;  %v1061_v32 = vld [vmem:[%s2636_s23 + $0x260] sm:$0xff]  ;;  %v1062_v33 = vld [vmem:[%s2636_s23 + $0x268] sm:$0xff] }
 0x160   : > { %1225 = vst [vmem:[%s1957_s9 + $0x6a0] sm:$0xff] %v1055_v26  ;;  %1226 = vst [vmem:[%s1957_s9 + $0x6b8] sm:$0xff] %v1056_v27  ;;  %v1063_v34 = vld [vmem:[%s2636_s23 + $0x270] sm:$0xff]  ;;  %v1064_v35 = vld [vmem:[%s2636_s23 + $0x278] sm:$0xff] }
 0x161   : > { %1227 = vst [vmem:[%s1957_s9 + $0x6d0] sm:$0xff] %v1057_v28  ;;  %1228 = vst [vmem:[%s1957_s9 + $0x6e8] sm:$0xff] %v1058_v29  ;;  %v1065_v36 = vld [vmem:[%s2636_s23 + $0x280] sm:$0xff]  ;;  %v1066_v37 = vld [vmem:[%s2636_s23 + $0x288] sm:$0xff] }
 0x162   : > { %1229 = vst [vmem:[%s1957_s9 + $0x700] sm:$0xff] %v1059_v30  ;;  %1230 = vst [vmem:[%s1957_s9 + $0x718] sm:$0xff] %v1060_v31  ;;  %v1067_v38 = vld [vmem:[%s2636_s23 + $0x290] sm:$0xff]  ;;  %v1068_v39 = vld [vmem:[%s2636_s23 + $0x298] sm:$0xff] }
 0x163   : > { %1231 = vst [vmem:[%s1957_s9 + $0x730] sm:$0xff] %v1061_v32  ;;  %1232 = vst [vmem:[%s1957_s9 + $0x748] sm:$0xff] %v1062_v33  ;;  %v1069_v40 = vld [vmem:[%s2636_s23 + $0x2a0] sm:$0xff]  ;;  %v1070_v41 = vld [vmem:[%s2636_s23 + $0x2a8] sm:$0xff] }
 0x164   : > { %1233 = vst [vmem:[%s1957_s9 + $0x760] sm:$0xff] %v1063_v34  ;;  %1234 = vst [vmem:[%s1957_s9 + $0x778] sm:$0xff] %v1064_v35  ;;  %v1071_v42 = vld [vmem:[%s2636_s23 + $0x2b0] sm:$0xff]  ;;  %v1072_v43 = vld [vmem:[%s2636_s23 + $0x2b8] sm:$0xff] }
 0x165   : > { %1235 = vst [vmem:[%s1957_s9 + $0x790] sm:$0xff] %v1065_v36  ;;  %1236 = vst [vmem:[%s1957_s9 + $0x7a8] sm:$0xff] %v1066_v37  ;;  %v1073_v44 = vld [vmem:[%s2636_s23 + $0x2c0] sm:$0xff]  ;;  %v1074_v45 = vld [vmem:[%s2636_s23 + $0x2c8] sm:$0xff] }
 0x166   : > { %1237 = vst [vmem:[%s1957_s9 + $0x7c0] sm:$0xff] %v1067_v38  ;;  %1238 = vst [vmem:[%s1957_s9 + $0x7d8] sm:$0xff] %v1068_v39  ;;  %v1075_v46 = vld [vmem:[%s2636_s23 + $0x2d0] sm:$0xff]  ;;  %v1076_v47 = vld [vmem:[%s2636_s23 + $0x2d8] sm:$0xff] }
 0x167   : > { %1239 = vst [vmem:[%s1957_s9 + $0x7f0] sm:$0xff] %v1069_v40  ;;  %1240 = vst [vmem:[%s1957_s9 + $0x808] sm:$0xff] %v1070_v41  ;;  %v1077_v48 = vld [vmem:[%s2636_s23 + $0x2e0] sm:$0xff]  ;;  %v1078_v49 = vld [vmem:[%s2636_s23 + $0x2e8] sm:$0xff] }
 0x168   : > { %1241 = vst [vmem:[%s1957_s9 + $0x820] sm:$0xff] %v1071_v42  ;;  %1242 = vst [vmem:[%s1957_s9 + $0x838] sm:$0xff] %v1072_v43  ;;  %v1079_v50 = vld [vmem:[%s2636_s23 + $0x2f0] sm:$0xff]  ;;  %v1080_v51 = vld [vmem:[%s2636_s23 + $0x2f8] sm:$0xff] }
 0x169   : > { %1243 = vst [vmem:[%s1957_s9 + $0x850] sm:$0xff] %v1073_v44  ;;  %1244 = vst [vmem:[%s1957_s9 + $0x868] sm:$0xff] %v1074_v45  ;;  %v1081_v52 = vld [vmem:[%s2636_s23 + $0x300] sm:$0xff]  ;;  %v1082_v53 = vld [vmem:[%s2636_s23 + $0x308] sm:$0xff] }
 0x16a   : > { %1245 = vst [vmem:[%s1957_s9 + $0x880] sm:$0xff] %v1075_v46  ;;  %1246 = vst [vmem:[%s1957_s9 + $0x898] sm:$0xff] %v1076_v47  ;;  %v1083_v54 = vld [vmem:[%s2636_s23 + $0x310] sm:$0xff]  ;;  %v1084_v55 = vld [vmem:[%s2636_s23 + $0x318] sm:$0xff] }
 0x16b   : > { %1247 = vst [vmem:[%s1957_s9 + $0x8b0] sm:$0xff] %v1077_v48  ;;  %1248 = vst [vmem:[%s1957_s9 + $0x8c8] sm:$0xff] %v1078_v49  ;;  %v1085_v56 = vld [vmem:[%s2636_s23 + $0x320] sm:$0xff]  ;;  %v1086_v57 = vld [vmem:[%s2636_s23 + $0x328] sm:$0xff] }
 0x16c   : > { %1249 = vst [vmem:[%s1957_s9 + $0x8e0] sm:$0xff] %v1079_v50  ;;  %1250 = vst [vmem:[%s1957_s9 + $0x8f8] sm:$0xff] %v1080_v51  ;;  %v1087_v58 = vld [vmem:[%s2636_s23 + $0x330] sm:$0xff]  ;;  %v1088_v59 = vld [vmem:[%s2636_s23 + $0x338] sm:$0xff] }
 0x16d   : > { %1251 = vst [vmem:[%s1957_s9 + $0x910] sm:$0xff] %v1081_v52  ;;  %1252 = vst [vmem:[%s1957_s9 + $0x928] sm:$0xff] %v1082_v53  ;;  %v1089_v60 = vld [vmem:[%s2636_s23 + $0x340] sm:$0xff]  ;;  %v1090_v61 = vld [vmem:[%s2636_s23 + $0x348] sm:$0xff] }
 0x16e   : > { %1253 = vst [vmem:[%s1957_s9 + $0x940] sm:$0xff] %v1083_v54  ;;  %1254 = vst [vmem:[%s1957_s9 + $0x958] sm:$0xff] %v1084_v55  ;;  %v1091_v62 = vld [vmem:[%s2636_s23 + $0x350] sm:$0xff]  ;;  %v1092_v63 = vld [vmem:[%s2636_s23 + $0x358] sm:$0xff] }
 0x16f   : > { %1255 = vst [vmem:[%s1957_s9 + $0x970] sm:$0xff] %v1085_v56  ;;  %1256 = vst [vmem:[%s1957_s9 + $0x988] sm:$0xff] %v1086_v57  ;;  %v1093_v0 = vld [vmem:[%s2636_s23 + $0x360] sm:$0xff]  ;;  %v1094_v1 = vld [vmem:[%s2636_s23 + $0x368] sm:$0xff] }
 0x170   : > { %1257 = vst [vmem:[%s1957_s9 + $0x9a0] sm:$0xff] %v1087_v58  ;;  %1258 = vst [vmem:[%s1957_s9 + $0x9b8] sm:$0xff] %v1088_v59  ;;  %v1095_v2 = vld [vmem:[%s2636_s23 + $0x370] sm:$0xff]  ;;  %v1096_v3 = vld [vmem:[%s2636_s23 + $0x378] sm:$0xff] }
 0x171   : > { %1259 = vst [vmem:[%s1957_s9 + $0x9d0] sm:$0xff] %v1089_v60  ;;  %1260 = vst [vmem:[%s1957_s9 + $0x9e8] sm:$0xff] %v1090_v61  ;;  %v1097_v4 = vld [vmem:[%s2636_s23 + $0x380] sm:$0xff]  ;;  %v1098_v5 = vld [vmem:[%s2636_s23 + $0x388] sm:$0xff] }
 0x172   : > { %1261 = vst [vmem:[%s1957_s9 + $0xa00] sm:$0xff] %v1091_v62  ;;  %1262 = vst [vmem:[%s1957_s9 + $0xa18] sm:$0xff] %v1092_v63  ;;  %v1099_v6 = vld [vmem:[%s2636_s23 + $0x390] sm:$0xff]  ;;  %v1100_v7 = vld [vmem:[%s2636_s23 + $0x398] sm:$0xff] }
 0x173   : > { %1263 = vst [vmem:[%s1957_s9 + $0xa30] sm:$0xff] %v1093_v0  ;;  %1264 = vst [vmem:[%s1957_s9 + $0xa48] sm:$0xff] %v1094_v1  ;;  %v1101_v8 = vld [vmem:[%s2636_s23 + $0x3a0] sm:$0xff]  ;;  %v1102_v9 = vld [vmem:[%s2636_s23 + $0x3a8] sm:$0xff] }
 0x174   : > { %1265 = vst [vmem:[%s1957_s9 + $0xa60] sm:$0xff] %v1095_v2  ;;  %1266 = vst [vmem:[%s1957_s9 + $0xa78] sm:$0xff] %v1096_v3  ;;  %v1103_v10 = vld [vmem:[%s2636_s23 + $0x3b0] sm:$0xff]  ;;  %v1104_v11 = vld [vmem:[%s2636_s23 + $0x3b8] sm:$0xff] }
 0x175   : > { %1267 = vst [vmem:[%s1957_s9 + $0xa90] sm:$0xff] %v1097_v4  ;;  %1268 = vst [vmem:[%s1957_s9 + $0xaa8] sm:$0xff] %v1098_v5  ;;  %v1105_v12 = vld [vmem:[%s2636_s23 + $0x3c0] sm:$0xff]  ;;  %v1106_v13 = vld [vmem:[%s2636_s23 + $0x3c8] sm:$0xff] }
 0x176   : > { %1269 = vst [vmem:[%s1957_s9 + $0xac0] sm:$0xff] %v1099_v6  ;;  %1270 = vst [vmem:[%s1957_s9 + $0xad8] sm:$0xff] %v1100_v7  ;;  %v1107_v14 = vld [vmem:[%s2636_s23 + $0x3d0] sm:$0xff]  ;;  %v1108_v15 = vld [vmem:[%s2636_s23 + $0x3d8] sm:$0xff] }
 0x177   : > { %1271 = vst [vmem:[%s1957_s9 + $0xaf0] sm:$0xff] %v1101_v8  ;;  %1272 = vst [vmem:[%s1957_s9 + $0xb08] sm:$0xff] %v1102_v9  ;;  %v1109_v16 = vld [vmem:[%s2636_s23 + $0x3e0] sm:$0xff]  ;;  %v1110_v17 = vld [vmem:[%s2636_s23 + $0x3e8] sm:$0xff] }
 0x178   : > { %1273 = vst [vmem:[%s1957_s9 + $0xb20] sm:$0xff] %v1103_v10  ;;  %1274 = vst [vmem:[%s1957_s9 + $0xb38] sm:$0xff] %v1104_v11  ;;  %v1111_v18 = vld [vmem:[%s2636_s23 + $0x3f0] sm:$0xff]  ;;  %v1112_v19 = vld [vmem:[%s2636_s23 + $0x3f8] sm:$0xff] }
 0x179   : > { %1275 = vst [vmem:[%s1957_s9 + $0xb50] sm:$0xff] %v1105_v12  ;;  %1276 = vst [vmem:[%s1957_s9 + $0xb68] sm:$0xff] %v1106_v13  ;;  %v1113_v20 = vld [vmem:[%s2636_s23 + $0x400] sm:$0xff]  ;;  %v1114_v21 = vld [vmem:[%s2636_s23 + $0x408] sm:$0xff] }
 0x17a   : > { %1277 = vst [vmem:[%s1957_s9 + $0xb80] sm:$0xff] %v1107_v14  ;;  %1278 = vst [vmem:[%s1957_s9 + $0xb98] sm:$0xff] %v1108_v15  ;;  %v1115_v22 = vld [vmem:[%s2636_s23 + $0x410] sm:$0xff]  ;;  %v1116_v23 = vld [vmem:[%s2636_s23 + $0x418] sm:$0xff] }
 0x17b   : > { %1279 = vst [vmem:[%s1957_s9 + $0xbb0] sm:$0xff] %v1109_v16  ;;  %1280 = vst [vmem:[%s1957_s9 + $0xbc8] sm:$0xff] %v1110_v17  ;;  %v1117_v24 = vld [vmem:[%s2636_s23 + $0x420] sm:$0xff]  ;;  %v1118_v25 = vld [vmem:[%s2636_s23 + $0x428] sm:$0xff] }
 0x17c   : > { %1281 = vst [vmem:[%s1957_s9 + $0xbe0] sm:$0xff] %v1111_v18  ;;  %1282 = vst [vmem:[%s1957_s9 + $0xbf8] sm:$0xff] %v1112_v19  ;;  %v1119_v26 = vld [vmem:[%s2636_s23 + $0x430] sm:$0xff]  ;;  %v1120_v27 = vld [vmem:[%s2636_s23 + $0x438] sm:$0xff] }
 0x17d   : > { %1283 = vst [vmem:[%s1957_s9 + $0xc10] sm:$0xff] %v1113_v20  ;;  %1284 = vst [vmem:[%s1957_s9 + $0xc28] sm:$0xff] %v1114_v21  ;;  %v1121_v28 = vld [vmem:[%s2636_s23 + $0x440] sm:$0xff]  ;;  %v1122_v29 = vld [vmem:[%s2636_s23 + $0x448] sm:$0xff] }
 0x17e   : > { %1285 = vst [vmem:[%s1957_s9 + $0xc40] sm:$0xff] %v1115_v22  ;;  %1286 = vst [vmem:[%s1957_s9 + $0xc58] sm:$0xff] %v1116_v23  ;;  %v1123_v30 = vld [vmem:[%s2636_s23 + $0x450] sm:$0xff]  ;;  %v1124_v31 = vld [vmem:[%s2636_s23 + $0x458] sm:$0xff] }
 0x17f   : > { %1287 = vst [vmem:[%s1957_s9 + $0xc70] sm:$0xff] %v1117_v24  ;;  %1288 = vst [vmem:[%s1957_s9 + $0xc88] sm:$0xff] %v1118_v25  ;;  %v1125_v32 = vld [vmem:[%s2636_s23 + $0x460] sm:$0xff]  ;;  %v1126_v33 = vld [vmem:[%s2636_s23 + $0x468] sm:$0xff] }
 0x180   : > { %1289 = vst [vmem:[%s1957_s9 + $0xca0] sm:$0xff] %v1119_v26  ;;  %1290 = vst [vmem:[%s1957_s9 + $0xcb8] sm:$0xff] %v1120_v27  ;;  %v1127_v34 = vld [vmem:[%s2636_s23 + $0x470] sm:$0xff]  ;;  %v1128_v35 = vld [vmem:[%s2636_s23 + $0x478] sm:$0xff] }
 0x181   : > { %1291 = vst [vmem:[%s1957_s9 + $0xcd0] sm:$0xff] %v1121_v28  ;;  %1292 = vst [vmem:[%s1957_s9 + $0xce8] sm:$0xff] %v1122_v29  ;;  %v1129_v36 = vld [vmem:[%s2636_s23 + $0x480] sm:$0xff]  ;;  %v1130_v37 = vld [vmem:[%s2636_s23 + $0x488] sm:$0xff] }
 0x182   : > { %1293 = vst [vmem:[%s1957_s9 + $0xd00] sm:$0xff] %v1123_v30  ;;  %1294 = vst [vmem:[%s1957_s9 + $0xd18] sm:$0xff] %v1124_v31  ;;  %v1131_v38 = vld [vmem:[%s2636_s23 + $0x490] sm:$0xff]  ;;  %v1132_v39 = vld [vmem:[%s2636_s23 + $0x498] sm:$0xff] }
 0x183   : > { %1295 = vst [vmem:[%s1957_s9 + $0xd30] sm:$0xff] %v1125_v32  ;;  %1296 = vst [vmem:[%s1957_s9 + $0xd48] sm:$0xff] %v1126_v33  ;;  %v1133_v40 = vld [vmem:[%s2636_s23 + $0x4a0] sm:$0xff]  ;;  %v1134_v41 = vld [vmem:[%s2636_s23 + $0x4a8] sm:$0xff] }
 0x184   : > { %1297 = vst [vmem:[%s1957_s9 + $0xd60] sm:$0xff] %v1127_v34  ;;  %1298 = vst [vmem:[%s1957_s9 + $0xd78] sm:$0xff] %v1128_v35  ;;  %v1135_v42 = vld [vmem:[%s2636_s23 + $0x4b0] sm:$0xff]  ;;  %v1136_v43 = vld [vmem:[%s2636_s23 + $0x4b8] sm:$0xff] }
 0x185   : > { %1299 = vst [vmem:[%s1957_s9 + $0xd90] sm:$0xff] %v1129_v36  ;;  %1300 = vst [vmem:[%s1957_s9 + $0xda8] sm:$0xff] %v1130_v37  ;;  %v1137_v44 = vld [vmem:[%s2636_s23 + $0x4c0] sm:$0xff]  ;;  %v1138_v45 = vld [vmem:[%s2636_s23 + $0x4c8] sm:$0xff] }
 0x186   : > { %1301 = vst [vmem:[%s1957_s9 + $0xdc0] sm:$0xff] %v1131_v38  ;;  %1302 = vst [vmem:[%s1957_s9 + $0xdd8] sm:$0xff] %v1132_v39  ;;  %v1139_v46 = vld [vmem:[%s2636_s23 + $0x4d0] sm:$0xff]  ;;  %v1140_v47 = vld [vmem:[%s2636_s23 + $0x4d8] sm:$0xff] }
 0x187   : > { %1303 = vst [vmem:[%s1957_s9 + $0xdf0] sm:$0xff] %v1133_v40  ;;  %1304 = vst [vmem:[%s1957_s9 + $0xe08] sm:$0xff] %v1134_v41  ;;  %v1141_v48 = vld [vmem:[%s2636_s23 + $0x4e0] sm:$0xff]  ;;  %v1142_v49 = vld [vmem:[%s2636_s23 + $0x4e8] sm:$0xff] }
 0x188   : > { %1305 = vst [vmem:[%s1957_s9 + $0xe20] sm:$0xff] %v1135_v42  ;;  %1306 = vst [vmem:[%s1957_s9 + $0xe38] sm:$0xff] %v1136_v43  ;;  %v1143_v50 = vld [vmem:[%s2636_s23 + $0x4f0] sm:$0xff]  ;;  %v1144_v51 = vld [vmem:[%s2636_s23 + $0x4f8] sm:$0xff] }
 0x189   : > { %1307 = vst [vmem:[%s1957_s9 + $0xe50] sm:$0xff] %v1137_v44  ;;  %1308 = vst [vmem:[%s1957_s9 + $0xe68] sm:$0xff] %v1138_v45  ;;  %v1145_v52 = vld [vmem:[%s2636_s23 + $0x500] sm:$0xff]  ;;  %v1146_v53 = vld [vmem:[%s2636_s23 + $0x508] sm:$0xff] }
 0x18a   : > { %1309 = vst [vmem:[%s1957_s9 + $0xe80] sm:$0xff] %v1139_v46  ;;  %1310 = vst [vmem:[%s1957_s9 + $0xe98] sm:$0xff] %v1140_v47  ;;  %v1147_v54 = vld [vmem:[%s2636_s23 + $0x510] sm:$0xff]  ;;  %v1148_v55 = vld [vmem:[%s2636_s23 + $0x518] sm:$0xff] }
 0x18b   : > { %1311 = vst [vmem:[%s1957_s9 + $0xeb0] sm:$0xff] %v1141_v48  ;;  %1312 = vst [vmem:[%s1957_s9 + $0xec8] sm:$0xff] %v1142_v49  ;;  %v1149_v56 = vld [vmem:[%s2636_s23 + $0x520] sm:$0xff]  ;;  %v1150_v57 = vld [vmem:[%s2636_s23 + $0x528] sm:$0xff]  ;;  %1332 = sbr.rel (!%p3051_p6) target bundleno = 431 (0x1af), region = 48 }
 0x18c   : > { %1313 = vst [vmem:[%s1957_s9 + $0xee0] sm:$0xff] %v1143_v50  ;;  %1314 = vst [vmem:[%s1957_s9 + $0xef8] sm:$0xff] %v1144_v51  ;;  %v1151_v58 = vld [vmem:[%s2636_s23 + $0x530] sm:$0xff]  ;;  %v1152_v59 = vld [vmem:[%s2636_s23 + $0x538] sm:$0xff] }
 0x18d   : > { %1315 = vst [vmem:[%s1957_s9 + $0xf10] sm:$0xff] %v1145_v52  ;;  %1316 = vst [vmem:[%s1957_s9 + $0xf28] sm:$0xff] %v1146_v53  ;;  %v1153_v60 = vld [vmem:[%s2636_s23 + $0x540] sm:$0xff]  ;;  %v1154_v61 = vld [vmem:[%s2636_s23 + $0x548] sm:$0xff] }
 0x18e   : > { %1317 = vst [vmem:[%s1957_s9 + $0xf40] sm:$0xff] %v1147_v54  ;;  %1318 = vst [vmem:[%s1957_s9 + $0xf58] sm:$0xff] %v1148_v55 }
 0x18f   : > { %1319 = vst [vmem:[%s1957_s9 + $0xf70] sm:$0xff] %v1149_v56  ;;  %1320 = vst [vmem:[%s1957_s9 + $0xf88] sm:$0xff] %v1150_v57 }
 0x190   : > { %1321 = vst [vmem:[%s1957_s9 + $0xfa0] sm:$0xff] %v1151_v58  ;;  %1322 = vst [vmem:[%s1957_s9 + $0xfb8] sm:$0xff] %v1152_v59 }
 0x191   : > { %1323 = vst [vmem:[%s1957_s9 + $0xfd0] sm:$0xff] %v1153_v60  ;;  %1324 = vst [vmem:[%s1957_s9 + $0xfe8] sm:$0xff] %v1154_v61 }
 0x192   : > { %s3065_s19 = smov (!%p1335_p5, %s1334_s19), 170 }
 0x193   : > { %s2983_s20 = smul.u32 384, %s3065_s19 }
 0x195   : > { %s1340_s27 = ssub.s32 65280, %s2983_s20 }
 0x196   : > { %1341 = vsyncadd %s1326_s10, %s1340_s27  ;;  %p1484_p13 = scmp.ne.s32.totalorder %s2983_s20, 0  ;;  %s1506_s24 = smul.u32 65280, %s1757_s16 }
 0x197   : > { %s1347_s28 = sshll.u32 %s1957_s9, 4  ;;  %s1713_s6 = smov [#allocation8]   ;;  %s2996_s28 = int_to_ptr.vmem [resolvable:$true] %s1347_s28 }
 0x198   : > { %s2994_s5 = scalar_lea.hbm %s3045_s3, %s1506_s24  ;;  %s1632_s11 = scalar_lea.vmem %s2996_s28, %s2983_s20 }
 0x199   : > { %p1633_p8 = scmp.ne.s32.totalorder %s2996_s28, %s1632_s11  ;;  %s1636_s26 = sshll.u32 %s1713_s6, 4  ;;  %s1637_s26 = int_to_ptr.vmem [resolvable:$false] %s1636_s26 }
 0x19a   : > { %s1638_s16 = scalar_lea.vmem %s1637_s26, 130560  ;;  %p1639_p2 = scmp.lt.s32.totalorder %s2996_s28, %s1637_s26 }
 0x19b   : > { %p1634_p12 = pnand %p1633_p8, %p1484_p13  ;;  %p1640_p10 = scmp.lt.s32.totalorder %s1638_s16, %s1632_s11 }
 0x19d   : > { %p1635_p0 = pneg %p1634_p12  ;;  %p1641_p1 = por %p1640_p10, %p1639_p2 }
 0x19f   : > { %p1642_p4 = pnand %p1641_p1, %p1635_p0 }
 0x1a1   : > { %1645 = shalt.err (!%p1642_p4)
}
 0x1a2   : > { %s1646_s29 = scalar_lea.hbm %s2994_s5, %s2983_s20  ;;  %s1650_s9 = scalar_lea.hbm %s3045_s3, 98304 }
 0x1a3   : > { %p1647_p7 = scmp.ne.s32.totalorder %s2994_s5, %s1646_s29  ;;  %p1651_p11 = scmp.lt.u32.totalorder %s2994_s5, %s3045_s3 }
 0x1a4   : > { %p1652_p6 = scmp.lt.u32.totalorder %s1650_s9, %s1646_s29  ;;  %p1654_p8 = scmp.lt.u32.totalorder %s1646_s29, %s2994_s5 }
 0x1a5   : > { %p1648_p3 = pnand %p1647_p7, %p1484_p13 }
 0x1a6   : > { %p1653_p5 = por %p1652_p6, %p1651_p11 }
 0x1a7   : > { %p1649_p9 = pneg %p1648_p3 }
 0x1a8   : > { %p1655_p12 = por %p1654_p8, %p1653_p5 }
 0x1aa   : > { %p1656_p0 = pnand %p1655_p12, %p1649_p9 }
 0x1ac   : > { %1659 = shalt.err (!%p1656_p0)
}
 0x1ad   : > { %s1714_s19 = smov 384   ;;  %s1715_s27 = smov 24  }
 0x1ae   : > { %1353 = dma.vmem_to_hbm [thread:$0]  (%p1484_p13), %s2996_s28, %s2983_s20, %s2994_s5, %s1326_s10, %s1714_s19, %s1714_s19, %s1715_s27  }
 0x1af PF: > { %s1362_s24 = sand.u32 1, %s1690_s12   ;;  %p3052_p2 = scmp.ne.s32.totalorder %s3050_s25, 0 }
 0x1b0   : > { %p3053_p10 = scmp.ge.s32.totalorder %s1702_s15, 2  ;;  %s1363_s22 = scalar_lea.sflag [#allocation4], %s1362_s24 }
 0x1b2   : > { %p1503_p1 = pnand %p3053_p10, %p3052_p2 }
 0x1b4   : > { %1685 = dma.done.wait (!%p1503_p1), %s1363_s22, 65280  }
 0x1b5   : > { %1687 = vsyncadd (!%p1503_p1), %s1363_s22, 4294902016  ;;  %p19_p4 = scmp.ge.s32.totalorder %s1761_s18, 4   ;;  %s3054_s12 = smov %s1694_s13 }
 0x1b6   : > { %s3055_s13 = smov %s1698_s14  ;;  %s3056_s14 = smov %s1773_s21 }
 0x1b7   : > { %s3057_s15 = smov %s1761_s18  ;;  %21 = sbr.rel (!%p19_p4) target bundleno = 7 (0x7), region = 101 }
 0x1be   :  { %1368 = vsyncpa [#allocation3], 1 }
 0x1bf   :  { %1370 = vsyncpa [#allocation3 + $0x1], 1 }
 0x1c0   :  { %1371 = vsyncpa [#allocation6], 1 }
 0x1c1   :  { %1373 = vsyncpa [#allocation6 + $0x1], 1 }
 0x1c2   :  { %1374 = vsyncpa [#allocation4], 1 }
 0x1c3   :  { %1376 = vsyncpa [#allocation4 + $0x1], 1 }

</bundles_post_ra>
